<compile_context>
chip_gen: v5e
topology: v5e:2x2
jax: 0.10.0
libtpu: 0.0.40
codegen_flags: <defaults>
</compile_context>

<pallas_src>
import math

import jax
import jax.numpy as jnp
from jax import lax
from jax.experimental import pallas as pl
from jax.experimental.pallas import tpu as pltpu


def init_params(key, out_ch):
    """Deterministic init mimicking torch defaults (uniform +-1/sqrt(fan_in));
    InstanceNorm affine params are randomized so the affine path is tested."""

    def u(key, shape, fan_in):
        bound = 1.0 / math.sqrt(fan_in)
        return jax.random.uniform(key, shape, jnp.float32, -bound, bound)

    params = {}
    for branch in ("mean", "logvar"):
        key, k1, k2, k3, k4, k5, k6 = jax.random.split(key, 7)
        w1 = u(k1, (32, 128, 1, 1), 128)
        b1 = u(k2, (32,), 128)
        gamma = 1.0 + 0.1 * jax.random.normal(k3, (32,), jnp.float32)
        beta = 0.1 * jax.random.normal(k4, (32,), jnp.float32)
        w2 = u(k5, (out_ch, 32, 12, 12), 32 * 12 * 12)
        b2 = u(k6, (out_ch,), 32 * 12 * 12)
        params[branch] = (w1, b1, gamma, beta, w2, b2)
    return params


@jax.jit
def domain_adaptor_theta_forward(in_tensor, params, eps_noise):
    """Returns (theta, mu, logvar), each (B, out_ch, 1, 1), matching the module."""
    B, C, H, W = in_tensor.shape            # static Python ints under jit
    assert C == 128 and H == 12 and W == 12, "kernel assumes a (B, 128, 12, 12) input"
    assert B == 2, "lane-packed kernel assumes B == 2 (2 * 64 hidden = 128 lanes)"
    HW = H * W

    w1m, b1m, gm, bm, w2m, b2m = params["mean"]
    w1l, b1l, gl, bl, w2l, b2l = params["logvar"]
    OC = w2m.shape[0]
    CH = 2 * w1m.shape[0]                   # 64 fused hidden channels per sample
    LN = B * CH                             # 128 lanes after batch packing
    assert OC <= 8, "output slab packs out_ch into 8 sublanes"

    # ---------------- host-side packing (cheap XLA ops, outside the kernel) ----------------
    # Activations: rows = spatial p (h*12 + w), lanes = [b0 channels | b1 channels].
    xt = jnp.transpose(in_tensor, (0, 2, 3, 1)).reshape(B, HW, C).astype(jnp.float32)
    x_packed = jnp.concatenate([xt[0], xt[1]], axis=1).astype(jnp.bfloat16)      # (144, 256)

    # Fused 1x1-conv weight of both heads (128, 64); conv1 bias dropped (InstanceNorm
    # mean subtraction cancels it exactly). Block-diagonal over batch -> (256, 128) bf16.
    W1f = jnp.concatenate([w1m[:, :, 0, 0].T, w1l[:, :, 0, 0].T], axis=1)        # (128, 64)
    zero = jnp.zeros((C, CH), jnp.float32)
    W1blk = jnp.concatenate(
        [jnp.concatenate([W1f, zero], axis=1),
         jnp.concatenate([zero, W1f], axis=1)], axis=0).astype(jnp.bfloat16)     # (256, 128)

    gamma128 = jnp.concatenate([gm, gl] * B)        # lane layout [b0m | b0l | b1m | b1l]
    beta128 = jnp.concatenate([bm, bl] * B)

    def arrange(w):  # (OC, 32, 12, 12) -> (OC, HW, 32), p = h*12 + w
        return jnp.transpose(w, (0, 2, 3, 1)).reshape(OC, HW, w.shape[1])

    w2m_a, w2l_a = arrange(w2m), arrange(w2l)
    # Lane-packed 12x12 conv weight, NO structural zeros: (OC, 144, 128) bf16.
    W2p = jnp.concatenate([w2m_a, w2l_a, w2m_a, w2l_a], axis=2).astype(jnp.bfloat16)

    # conv2 bias in the segmented-reduce layout: cols = (mu_b0, lv_b0, mu_b1, lv_b1).
    b2p = jnp.zeros((8, 4), jnp.float32)
    b2p = b2p.at[0:OC, 0].set(b2m).at[0:OC, 1].set(b2l)
    b2p = b2p.at[0:OC, 2].set(b2m).at[0:OC, 3].set(b2l)
    epsp = jnp.zeros((8, B), jnp.float32).at[0:OC, :].set(eps_noise.astype(jnp.float32).T)

    # One small f32 slab for every remaining parameter -> one DMA (8-aligned row groups).
    P = jnp.zeros((24, LN), jnp.float32)
    P = P.at[0, :].set(gamma128)                 # row 0      : gamma (128 lanes)
    P = P.at[1, :].set(beta128)                  # row 1      : beta  (128 lanes)
    P = P.at[8:16, 0:4].set(b2p)                 # rows 8:16  : conv2 bias (OC, 4)
    P = P.at[16:24, 0:B].set(epsp)               # rows 16:24 : sampling noise (OC, B)

    # ---------------- the fused kernel ----------------
    def kernel(x_ref, w1_ref, w2_ref, p_ref, out_ref, acc_ref):
        gamma = p_ref[0:1, :]                    # (1, 128)
        beta = p_ref[1:2, :]                     # (1, 128)
        b2 = p_ref[8:16, 0:4]                    # (8, 4)
        eps = p_ref[16:24, 0:B]                  # (8, B)

        # Both heads, both samples: one bf16 MXU matmul with f32 accumulation.
        h = jnp.dot(x_ref[...], w1_ref[...],
                    preferred_element_type=jnp.float32)          # (144, 128) f32

        # InstanceNorm2d(affine=True): each lane is a distinct (sample, head,
        # channel), so per-(sample, channel) stats are plain sublane reductions
        # at full lane occupancy.  All elementwise math stays f32 (v5e-safe).
        m = jnp.mean(h, axis=0, keepdims=True)
        v = jnp.mean((h - m) ** 2, axis=0, keepdims=True)
        hb = (h - m) * lax.rsqrt(v + 1e-5) * gamma + beta
        hb = jnp.where(hb > 0, hb, 0.01 * hb)                    # LeakyReLU(0.01)

        # 12x12 / stride-12 conv == full (spatial, channel) contraction.
        # Loop over output channels bounds the live broadcast intermediate to a
        # single (144, 128) f32 tile (~18 vregs); w2 is bf16 and upcast per use.
        acc_ref[...] = jnp.zeros_like(acc_ref)

        def body(o, carry):
            prod = hb * w2_ref[o].astype(jnp.float32)            # (144, 128) f32
            acc_ref[pl.ds(o, 1), :] = jnp.sum(prod, axis=0, keepdims=True)
            return carry

        lax.fori_loop(0, OC, body, None, unroll=True)

        # Segmented lane reduce: lane groups -> (mu_b0, logvar_b0, mu_b1, logvar_b1).
        acc = acc_ref[...]                                       # (8, 128)
        half = CH // 2                                           # 32 lanes per group
        z = jnp.concatenate(
            [jnp.sum(acc[:, g * half:(g + 1) * half], axis=1, keepdims=True)
             for g in range(2 * B)], axis=1) + b2                # (8, 4)

        mu = jnp.concatenate([z[:, 0:1], z[:, 2:3]], axis=1)     # (8, B), cols = batch
        logvar = jnp.concatenate([z[:, 1:2], z[:, 3:4]], axis=1)
        theta = eps * jnp.exp(0.5 * logvar) + mu                 # randn*sqrt(exp(lv)) + mu

        # Lane-dense single-vreg writeback: cols = [theta(B) | mu(B) | logvar(B) | 0...].
        out_ref[...] = jnp.concatenate(
            [theta, mu, logvar, jnp.zeros((8, LN - 3 * B), jnp.float32)], axis=1)

    flops = 2 * HW * (B * C) * LN + 2 * OC * HW * LN
    bytes_accessed = (x_packed.size + W1blk.size + W2p.size) * 2 + (P.size + 8 * LN) * 4
    cost = pl.CostEstimate(flops=flops, transcendentals=LN + 8 * B,
                           bytes_accessed=bytes_accessed)

    vmem = pl.BlockSpec(memory_space=pltpu.MemorySpace.VMEM)
    out = pl.pallas_call(
        kernel,
        out_shape=jax.ShapeDtypeStruct((8, LN), jnp.float32),
        in_specs=[vmem, vmem, vmem, vmem],
        out_specs=vmem,
        scratch_shapes=[pltpu.VMEM((8, LN), jnp.float32)],
        cost_estimate=cost,
    )(x_packed, W1blk, W2p, P)

    theta = out[0:OC, 0:B].T.reshape(B, OC, 1, 1)
    mu = out[0:OC, B:2 * B].T.reshape(B, OC, 1, 1)
    logvar = out[0:OC, 2 * B:3 * B].T.reshape(B, OC, 1, 1)
    return theta, mu, logvar


def reference_forward(in_tensor, params, eps_noise):
    """Independent pure-JAX/XLA reference of the PyTorch module (incl. conv1 bias)."""

    def branch(x, w1, b1, gamma, beta, w2, b2):
        y = lax.conv_general_dilated(
            x, w1, window_strides=(1, 1), padding="VALID",
            dimension_numbers=("NCHW", "OIHW", "NCHW"),
            precision=lax.Precision.HIGHEST)
        y = y + b1[None, :, None, None]
        m = jnp.mean(y, axis=(2, 3), keepdims=True)
        v = jnp.mean((y - m) ** 2, axis=(2, 3), keepdims=True)
        y = (y - m) / jnp.sqrt(v + 1e-5) * gamma[None, :, None, None] + beta[None, :, None, None]
        y = jnp.where(y > 0, y, 0.01 * y)
        z = lax.conv_general_dilated(
            y, w2, window_strides=(12, 12), padding="VALID",
            dimension_numbers=("NCHW", "OIHW", "NCHW"),
            precision=lax.Precision.HIGHEST)
        return z + b2[None, :, None, None]

    mu = branch(in_tensor, *params["mean"])
    logvar = branch(in_tensor, *params["logvar"])
    B, OC = mu.shape[0], mu.shape[1]
    theta = eps_noise.reshape(B, OC, 1, 1) * jnp.sqrt(jnp.exp(logvar)) + mu
    return theta, mu, logvar


if __name__ == "__main__":
    key = jax.random.PRNGKey(0)
    k_x, k_p, k_e = jax.random.split(key, 3)

    # Shapes consistent with the module: Conv2d(128,...) then a 12x12 stride-12
    # conv -> a (B, 128, 12, 12) feature map; out_ch = 6 (2x3 theta).
    B, CIN, H, W = 2, 128, 12, 12
    out_ch = 6

    in_tensor = jax.random.normal(k_x, (B, CIN, H, W), dtype=jnp.float32)
    params = init_params(k_p, out_ch)
    eps_noise = jax.random.normal(k_e, (B, out_ch), dtype=jnp.float32)

    theta, mu, logvar = domain_adaptor_theta_forward(in_tensor, params, eps_noise)
    jax.block_until_ready((theta, mu, logvar))

    theta_r, mu_r, logvar_r = reference_forward(in_tensor, params, eps_noise)

    assert theta.shape == (B, out_ch, 1, 1)
    assert mu.shape == (B, out_ch, 1, 1) and logvar.shape == (B, out_ch, 1, 1)
    # Tolerance covers bf16 MXU operands + bf16 W2 storage (observed error ~1e-3;
    # accumulation and all elementwise math are f32). Real layout/fusion bugs are O(1).
    assert jnp.allclose(mu, mu_r, atol=2e-2, rtol=2e-2)
    assert jnp.allclose(logvar, logvar_r, atol=2e-2, rtol=2e-2)
    assert jnp.allclose(theta, theta_r, atol=2e-2, rtol=2e-2)

    print("KERNEL_OK")
</pallas_src>

<mosaic_0001>
module attributes {stable_mosaic.version = 11 : i64} {
  func.func @kernel(%arg0: memref<144x256xbf16, #tpu.memory_space<vmem>>, %arg1: memref<256x128xbf16, #tpu.memory_space<vmem>>, %arg2: memref<6x144x128xbf16, #tpu.memory_space<vmem>>, %arg3: memref<24x128xf32, #tpu.memory_space<vmem>>, %arg4: memref<8x128xf32, #tpu.memory_space<vmem>>, %arg5: memref<8x128xf32, #tpu.memory_space<vmem>>) attributes {dimension_semantics = [], scalar_prefetch = 0 : i64, scratch_operands = 1 : i64, tpu.core_type = #tpu.core_type<tc>} {
    %c0 = arith.constant 0 : index
    %c0_0 = arith.constant 0 : index
    %0 = vector.load %arg3[%c0, %c0_0] : memref<24x128xf32, #tpu.memory_space<vmem>>, vector<1x128xf32>
    %c1 = arith.constant 1 : index
    %c0_1 = arith.constant 0 : index
    %1 = vector.load %arg3[%c1, %c0_1] : memref<24x128xf32, #tpu.memory_space<vmem>>, vector<1x128xf32>
    %c8 = arith.constant 8 : index
    %c0_2 = arith.constant 0 : index
    %2 = vector.load %arg3[%c8, %c0_2] : memref<24x128xf32, #tpu.memory_space<vmem>>, vector<8x4xf32>
    %c16 = arith.constant 16 : index
    %c0_3 = arith.constant 0 : index
    %3 = vector.load %arg3[%c16, %c0_3] : memref<24x128xf32, #tpu.memory_space<vmem>>, vector<8x2xf32>
    %c0_4 = arith.constant 0 : index
    %c0_5 = arith.constant 0 : index
    %4 = vector.load %arg0[%c0_4, %c0_5] : memref<144x256xbf16, #tpu.memory_space<vmem>>, vector<144x256xbf16>
    %c0_6 = arith.constant 0 : index
    %c0_7 = arith.constant 0 : index
    %5 = vector.load %arg1[%c0_6, %c0_7] : memref<256x128xbf16, #tpu.memory_space<vmem>>, vector<256x128xbf16>
    %cst = arith.constant dense<0.000000e+00> : vector<144x128xf32>
    %6 = tpu.matmul %4, %5, %cst {dimension_numbers = #tpu.dot_dimension_numbers<[1], [0], [0], [1], [0, 0, 1, 1], [], []>} : vector<144x256xbf16>, vector<256x128xbf16>, vector<144x128xf32> -> vector<144x128xf32>
    %cst_8 = arith.constant dense<0.000000e+00> : vector<128xf32>
    %7 = vector.multi_reduction <add>, %6, %cst_8 [0] : vector<144x128xf32> to vector<128xf32>
    %8 = vector.shape_cast %7 : vector<128xf32> to vector<1x128xf32>
    %cst_9 = arith.constant 1.440000e+02 : f32
    %9 = vector.broadcast %cst_9 : f32 to vector<1x128xf32>
    %10 = arith.divf %8, %9 : vector<1x128xf32>
    %11 = vector.broadcast %10 : vector<1x128xf32> to vector<144x128xf32>
    %12 = arith.subf %6, %11 : vector<144x128xf32>
    %13 = arith.mulf %12, %12 : vector<144x128xf32>
    %cst_10 = arith.constant dense<0.000000e+00> : vector<128xf32>
    %14 = vector.multi_reduction <add>, %13, %cst_10 [0] : vector<144x128xf32> to vector<128xf32>
    %15 = vector.shape_cast %14 : vector<128xf32> to vector<1x128xf32>
    %cst_11 = arith.constant 1.440000e+02 : f32
    %16 = vector.broadcast %cst_11 : f32 to vector<1x128xf32>
    %17 = arith.divf %15, %16 : vector<1x128xf32>
    %18 = vector.broadcast %10 : vector<1x128xf32> to vector<144x128xf32>
    %19 = arith.subf %6, %18 : vector<144x128xf32>
    %cst_12 = arith.constant 9.99999974E-6 : f32
    %20 = vector.broadcast %cst_12 : f32 to vector<1x128xf32>
    %21 = arith.addf %17, %20 : vector<1x128xf32>
    %22 = math.rsqrt %21 : vector<1x128xf32>
    %23 = vector.broadcast %22 : vector<1x128xf32> to vector<144x128xf32>
    %24 = arith.mulf %19, %23 : vector<144x128xf32>
    %25 = vector.broadcast %0 : vector<1x128xf32> to vector<144x128xf32>
    %26 = arith.mulf %24, %25 : vector<144x128xf32>
    %27 = vector.broadcast %1 : vector<1x128xf32> to vector<144x128xf32>
    %28 = arith.addf %26, %27 : vector<144x128xf32>
    %cst_13 = arith.constant 0.000000e+00 : f32
    %29 = vector.broadcast %cst_13 : f32 to vector<144x128xf32>
    %30 = arith.cmpf ogt, %28, %29 : vector<144x128xf32>
    %cst_14 = arith.constant 0.00999999977 : f32
    %31 = vector.broadcast %cst_14 : f32 to vector<144x128xf32>
    %32 = arith.mulf %31, %28 : vector<144x128xf32>
    %33 = arith.select %30, %28, %32 : vector<144x128xi1>, vector<144x128xf32>
    %cst_15 = arith.constant 0.000000e+00 : f32
    %34 = vector.broadcast %cst_15 : f32 to vector<8x128xf32>
    %c0_16 = arith.constant 0 : index
    %c0_17 = arith.constant 0 : index
    %35 = vector.load %arg5[%c0_16, %c0_17] : memref<8x128xf32, #tpu.memory_space<vmem>>, vector<8x128xf32>
    tpu.vector_store %arg5[%c0_16, %c0_17], %34 {strides = array<i32>} : memref<8x128xf32, #tpu.memory_space<vmem>>, vector<8x128xf32>,
    %c0_i32 = arith.constant 0 : i32
    %36 = arith.index_cast %c0_i32 : i32 to index
    %c0_18 = arith.constant 0 : index
    %c0_19 = arith.constant 0 : index
    %37 = vector.load %arg2[%36, %c0_18, %c0_19] : memref<6x144x128xbf16, #tpu.memory_space<vmem>>, vector<1x144x128xbf16>
    %38 = vector.shape_cast %37 : vector<1x144x128xbf16> to vector<144x128xbf16>
    %39 = arith.extf %38 : vector<144x128xbf16> to vector<144x128xf32>
    %40 = arith.mulf %33, %39 : vector<144x128xf32>
    %cst_20 = arith.constant dense<0.000000e+00> : vector<128xf32>
    %41 = vector.multi_reduction <add>, %40, %cst_20 [0] : vector<144x128xf32> to vector<128xf32>
    %42 = vector.shape_cast %41 : vector<128xf32> to vector<1x128xf32>
    %43 = arith.index_cast %c0_i32 : i32 to index
    %c0_21 = arith.constant 0 : index
    %44 = vector.load %arg5[%43, %c0_21] : memref<8x128xf32, #tpu.memory_space<vmem>>, vector<1x128xf32>
    tpu.vector_store %arg5[%43, %c0_21], %42 {strides = array<i32>} : memref<8x128xf32, #tpu.memory_space<vmem>>, vector<1x128xf32>,
    %c1_i32 = arith.constant 1 : i32
    %45 = arith.index_cast %c1_i32 : i32 to index
    %c0_22 = arith.constant 0 : index
    %c0_23 = arith.constant 0 : index
    %46 = vector.load %arg2[%45, %c0_22, %c0_23] : memref<6x144x128xbf16, #tpu.memory_space<vmem>>, vector<1x144x128xbf16>
    %47 = vector.shape_cast %46 : vector<1x144x128xbf16> to vector<144x128xbf16>
    %48 = arith.extf %47 : vector<144x128xbf16> to vector<144x128xf32>
    %49 = arith.mulf %33, %48 : vector<144x128xf32>
    %cst_24 = arith.constant dense<0.000000e+00> : vector<128xf32>
    %50 = vector.multi_reduction <add>, %49, %cst_24 [0] : vector<144x128xf32> to vector<128xf32>
    %51 = vector.shape_cast %50 : vector<128xf32> to vector<1x128xf32>
    %52 = arith.index_cast %c1_i32 : i32 to index
    %c0_25 = arith.constant 0 : index
    %53 = vector.load %arg5[%52, %c0_25] : memref<8x128xf32, #tpu.memory_space<vmem>>, vector<1x128xf32>
    tpu.vector_store %arg5[%52, %c0_25], %51 {strides = array<i32>} : memref<8x128xf32, #tpu.memory_space<vmem>>, vector<1x128xf32>,
    %c2_i32 = arith.constant 2 : i32
    %54 = arith.index_cast %c2_i32 : i32 to index
    %c0_26 = arith.constant 0 : index
    %c0_27 = arith.constant 0 : index
    %55 = vector.load %arg2[%54, %c0_26, %c0_27] : memref<6x144x128xbf16, #tpu.memory_space<vmem>>, vector<1x144x128xbf16>
    %56 = vector.shape_cast %55 : vector<1x144x128xbf16> to vector<144x128xbf16>
    %57 = arith.extf %56 : vector<144x128xbf16> to vector<144x128xf32>
    %58 = arith.mulf %33, %57 : vector<144x128xf32>
    %cst_28 = arith.constant dense<0.000000e+00> : vector<128xf32>
    %59 = vector.multi_reduction <add>, %58, %cst_28 [0] : vector<144x128xf32> to vector<128xf32>
    %60 = vector.shape_cast %59 : vector<128xf32> to vector<1x128xf32>
    %61 = arith.index_cast %c2_i32 : i32 to index
    %c0_29 = arith.constant 0 : index
    %62 = vector.load %arg5[%61, %c0_29] : memref<8x128xf32, #tpu.memory_space<vmem>>, vector<1x128xf32>
    tpu.vector_store %arg5[%61, %c0_29], %60 {strides = array<i32>} : memref<8x128xf32, #tpu.memory_space<vmem>>, vector<1x128xf32>,
    %c3_i32 = arith.constant 3 : i32
    %63 = arith.index_cast %c3_i32 : i32 to index
    %c0_30 = arith.constant 0 : index
    %c0_31 = arith.constant 0 : index
    %64 = vector.load %arg2[%63, %c0_30, %c0_31] : memref<6x144x128xbf16, #tpu.memory_space<vmem>>, vector<1x144x128xbf16>
    %65 = vector.shape_cast %64 : vector<1x144x128xbf16> to vector<144x128xbf16>
    %66 = arith.extf %65 : vector<144x128xbf16> to vector<144x128xf32>
    %67 = arith.mulf %33, %66 : vector<144x128xf32>
    %cst_32 = arith.constant dense<0.000000e+00> : vector<128xf32>
    %68 = vector.multi_reduction <add>, %67, %cst_32 [0] : vector<144x128xf32> to vector<128xf32>
    %69 = vector.shape_cast %68 : vector<128xf32> to vector<1x128xf32>
    %70 = arith.index_cast %c3_i32 : i32 to index
    %c0_33 = arith.constant 0 : index
    %71 = vector.load %arg5[%70, %c0_33] : memref<8x128xf32, #tpu.memory_space<vmem>>, vector<1x128xf32>
    tpu.vector_store %arg5[%70, %c0_33], %69 {strides = array<i32>} : memref<8x128xf32, #tpu.memory_space<vmem>>, vector<1x128xf32>,
    %c4_i32 = arith.constant 4 : i32
    %72 = arith.index_cast %c4_i32 : i32 to index
    %c0_34 = arith.constant 0 : index
    %c0_35 = arith.constant 0 : index
    %73 = vector.load %arg2[%72, %c0_34, %c0_35] : memref<6x144x128xbf16, #tpu.memory_space<vmem>>, vector<1x144x128xbf16>
    %74 = vector.shape_cast %73 : vector<1x144x128xbf16> to vector<144x128xbf16>
    %75 = arith.extf %74 : vector<144x128xbf16> to vector<144x128xf32>
    %76 = arith.mulf %33, %75 : vector<144x128xf32>
    %cst_36 = arith.constant dense<0.000000e+00> : vector<128xf32>
    %77 = vector.multi_reduction <add>, %76, %cst_36 [0] : vector<144x128xf32> to vector<128xf32>
    %78 = vector.shape_cast %77 : vector<128xf32> to vector<1x128xf32>
    %79 = arith.index_cast %c4_i32 : i32 to index
    %c0_37 = arith.constant 0 : index
    %80 = vector.load %arg5[%79, %c0_37] : memref<8x128xf32, #tpu.memory_space<vmem>>, vector<1x128xf32>
    tpu.vector_store %arg5[%79, %c0_37], %78 {strides = array<i32>} : memref<8x128xf32, #tpu.memory_space<vmem>>, vector<1x128xf32>,
    %c5_i32 = arith.constant 5 : i32
    %81 = arith.index_cast %c5_i32 : i32 to index
    %c0_38 = arith.constant 0 : index
    %c0_39 = arith.constant 0 : index
    %82 = vector.load %arg2[%81, %c0_38, %c0_39] : memref<6x144x128xbf16, #tpu.memory_space<vmem>>, vector<1x144x128xbf16>
    %83 = vector.shape_cast %82 : vector<1x144x128xbf16> to vector<144x128xbf16>
    %84 = arith.extf %83 : vector<144x128xbf16> to vector<144x128xf32>
    %85 = arith.mulf %33, %84 : vector<144x128xf32>
    %cst_40 = arith.constant dense<0.000000e+00> : vector<128xf32>
    %86 = vector.multi_reduction <add>, %85, %cst_40 [0] : vector<144x128xf32> to vector<128xf32>
    %87 = vector.shape_cast %86 : vector<128xf32> to vector<1x128xf32>
    %88 = arith.index_cast %c5_i32 : i32 to index
    %c0_41 = arith.constant 0 : index
    %89 = vector.load %arg5[%88, %c0_41] : memref<8x128xf32, #tpu.memory_space<vmem>>, vector<1x128xf32>
    tpu.vector_store %arg5[%88, %c0_41], %87 {strides = array<i32>} : memref<8x128xf32, #tpu.memory_space<vmem>>, vector<1x128xf32>,
    %c6_i32 = arith.constant 6 : i32
    %c0_42 = arith.constant 0 : index
    %c0_43 = arith.constant 0 : index
    %90 = vector.load %arg5[%c0_42, %c0_43] : memref<8x128xf32, #tpu.memory_space<vmem>>, vector<8x128xf32>
    %91 = vector.extract_strided_slice %90 {offsets = [0, 0], sizes = [8, 32], strides = [1, 1]} : vector<8x128xf32> to vector<8x32xf32>
    %cst_44 = arith.constant dense<0.000000e+00> : vector<8xf32>
    %92 = vector.multi_reduction <add>, %91, %cst_44 [1] : vector<8x32xf32> to vector<8xf32>
    %93 = vector.shape_cast %92 : vector<8xf32> to vector<8x1xf32>
    %94 = vector.extract_strided_slice %90 {offsets = [0, 32], sizes = [8, 32], strides = [1, 1]} : vector<8x128xf32> to vector<8x32xf32>
    %cst_45 = arith.constant dense<0.000000e+00> : vector<8xf32>
    %95 = vector.multi_reduction <add>, %94, %cst_45 [1] : vector<8x32xf32> to vector<8xf32>
    %96 = vector.shape_cast %95 : vector<8xf32> to vector<8x1xf32>
    %97 = vector.extract_strided_slice %90 {offsets = [0, 64], sizes = [8, 32], strides = [1, 1]} : vector<8x128xf32> to vector<8x32xf32>
    %cst_46 = arith.constant dense<0.000000e+00> : vector<8xf32>
    %98 = vector.multi_reduction <add>, %97, %cst_46 [1] : vector<8x32xf32> to vector<8xf32>
    %99 = vector.shape_cast %98 : vector<8xf32> to vector<8x1xf32>
    %100 = vector.extract_strided_slice %90 {offsets = [0, 96], sizes = [8, 32], strides = [1, 1]} : vector<8x128xf32> to vector<8x32xf32>
    %cst_47 = arith.constant dense<0.000000e+00> : vector<8xf32>
    %101 = vector.multi_reduction <add>, %100, %cst_47 [1] : vector<8x32xf32> to vector<8xf32>
    %102 = vector.shape_cast %101 : vector<8xf32> to vector<8x1xf32>
    %103 = tpu.concatenate %93, %96, %99, %102 in 1 : vector<8x1xf32>, vector<8x1xf32>, vector<8x1xf32>, vector<8x1xf32> -> vector<8x4xf32>
    %104 = arith.addf %103, %2 : vector<8x4xf32>
    %105 = vector.extract_strided_slice %104 {offsets = [0, 0], sizes = [8, 1], strides = [1, 1]} : vector<8x4xf32> to vector<8x1xf32>
    %106 = vector.extract_strided_slice %104 {offsets = [0, 2], sizes = [8, 1], strides = [1, 1]} : vector<8x4xf32> to vector<8x1xf32>
    %107 = tpu.concatenate %105, %106 in 1 : vector<8x1xf32>, vector<8x1xf32> -> vector<8x2xf32>
    %108 = vector.extract_strided_slice %104 {offsets = [0, 1], sizes = [8, 1], strides = [1, 1]} : vector<8x4xf32> to vector<8x1xf32>
    %109 = vector.extract_strided_slice %104 {offsets = [0, 3], sizes = [8, 1], strides = [1, 1]} : vector<8x4xf32> to vector<8x1xf32>
    %110 = tpu.concatenate %108, %109 in 1 : vector<8x1xf32>, vector<8x1xf32> -> vector<8x2xf32>
    %cst_48 = arith.constant 5.000000e-01 : f32
    %111 = vector.broadcast %cst_48 : f32 to vector<8x2xf32>
    %112 = arith.mulf %111, %110 : vector<8x2xf32>
    %113 = math.exp %112 : vector<8x2xf32>
    %114 = arith.mulf %3, %113 : vector<8x2xf32>
    %115 = arith.addf %114, %107 : vector<8x2xf32>
    %cst_49 = arith.constant 0.000000e+00 : f32
    %116 = vector.broadcast %cst_49 : f32 to vector<8x122xf32>
    %117 = tpu.concatenate %115, %107, %110, %116 in 1 : vector<8x2xf32>, vector<8x2xf32>, vector<8x2xf32>, vector<8x122xf32> -> vector<8x128xf32>
    %c0_50 = arith.constant 0 : index
    %c0_51 = arith.constant 0 : index
    %118 = vector.load %arg4[%c0_50, %c0_51] : memref<8x128xf32, #tpu.memory_space<vmem>>, vector<8x128xf32>
    tpu.vector_store %arg4[%c0_50, %c0_51], %117 {strides = array<i32>} : memref<8x128xf32, #tpu.memory_space<vmem>>, vector<8x128xf32>,
    return
  }
}

</mosaic_0001>

<bundles_post_ra>
// kernel: squeeze.1
= control target key start
LH: loop header
LB: loop body
LE: loop exit
PB: predicated region body
PF: predicated region fallthrough
CT: control target
= control target key end

     0   :  { %s839_s0 = inlined_call_operand.vmem [shape: bf16[12,12,128], index: 0, kind: input, shape index: {}]   ;;  %s840_s1 = inlined_call_operand.vmem [shape: bf16[144,128], index: 1, kind: output, shape index: {}]  }
   0x1   :  { %v747_v0 = vld [vmem:[%s839_s0 + $0x58] sm:$0xff]   ;;  %v752_v1 = vld [vmem:[%s839_s0 + $0x50] sm:$0xff]   ;;  %v757_v2 = vld [vmem:[%s839_s0 + $0x48] sm:$0xff]  }
   0x2   :  { %v625_v3 = vunpack.c.h.bf16 %v747_v0  ;;  %v629_v4 = vunpack.c.h.bf16 %v752_v1  ;;  %v624_v5 = vunpack.c.l.bf16 %v747_v0  ;;  %v765_v6 = vld [vmem:[%s839_s0 + $0x40] sm:$0xff]   ;;  %v633_v7 = vunpack.c.h.bf16 %v757_v2  ;;  %v719_v9 = vld [vmem:[%s839_s0 + $0x38] sm:$0xff]   ;;  %v777_v12 = vld [vmem:[%s839_s0 + $0x30] sm:$0xff]  }
   0x3   :  { %v628_v8 = vunpack.c.l.bf16 %v752_v1  ;;  %v637_v10 = vunpack.c.h.bf16 %v765_v6  ;;  %v632_v11 = vunpack.c.l.bf16 %v757_v2  ;;  %v641_v13 = vunpack.c.h.bf16 %v719_v9  ;;  %v721_v15 = vld [vmem:[%s839_s0 + $0x28] sm:$0xff]   ;;  %v787_v18 = vld [vmem:[%s839_s0 + $0x20] sm:$0xff]   ;;  %v723_v21 = vld [vmem:[%s839_s0 + $0x18] sm:$0xff]  }
   0x4   :  { %18 = vst [vmem:[#allocation1 + $0x8] sm:$0xff] %v625_v3  ;;  %v636_v14 = vunpack.c.l.bf16 %v765_v6  ;;  %v645_v16 = vunpack.c.h.bf16 %v777_v12  ;;  %v640_v17 = vunpack.c.l.bf16 %v719_v9  ;;  %v649_v19 = vunpack.c.h.bf16 %v721_v15  ;;  %v724_v24 = vld [vmem:[%s839_s0 + $0x10] sm:$0xff]   ;;  %v725_v27 = vld [vmem:[%s839_s0 + $0x8] sm:$0xff]   ;;  %v667_v30 = vld [vmem:[%s839_s0] sm:$0xff]  }
   0x5   :  { %48 = vst [vmem:[#allocation1 + $0xa8] sm:$0xff] %v629_v4  ;;  %v644_v20 = vunpack.c.l.bf16 %v777_v12  ;;  %v653_v22 = vunpack.c.h.bf16 %v787_v18  ;;  %v648_v23 = vunpack.c.l.bf16 %v721_v15  ;;  %v657_v25 = vunpack.c.h.bf16 %v723_v21 }
   0x6   :  { %78 = vst [vmem:[#allocation1 + $0x58] sm:$0xff] %v633_v7  ;;  %v652_v26 = vunpack.c.l.bf16 %v787_v18  ;;  %v661_v28 = vunpack.c.h.bf16 %v724_v24  ;;  %v656_v29 = vunpack.c.l.bf16 %v723_v21  ;;  %v665_v31 = vunpack.c.h.bf16 %v725_v27 }
   0x7   :  { %108 = vst [vmem:[#allocation1 + $0x78] sm:$0xff] %v637_v10  ;;  %v660_v32 = vunpack.c.l.bf16 %v724_v24  ;;  %v669_v33 = vunpack.c.h.bf16 %v667_v30  ;;  %v664_v34 = vunpack.c.l.bf16 %v725_v27  ;;  %v668_v35 = vunpack.c.l.bf16 %v667_v30 }
   0x8   :  { %138 = vst [vmem:[#allocation1 + $0x30] sm:$0xff] %v641_v13 }
   0x9   :  { %168 = vst [vmem:[#allocation1 + $0xa0] sm:$0xff] %v645_v16 }
   0xa   :  { %198 = vst [vmem:[#allocation1 + $0x80] sm:$0xff] %v649_v19 }
   0xb   :  { %228 = vst [vmem:[#allocation1 + $0x48] sm:$0xff] %v653_v22  ;;  %v453_v51 = vld [vmem:[#allocation1 + $0x8] sm:$0xf]  }
   0xc   :  { %258 = vst [vmem:[#allocation1 + $0x10] sm:$0xff] %v657_v25  ;;  %v445_v47 = vld [vmem:[#allocation1 + $0xa8] sm:$0xf]  }
   0xd   :  { %288 = vst [vmem:[#allocation1 + $0x88] sm:$0xff] %v661_v28  ;;  %v437_v45 = vld [vmem:[#allocation1 + $0x58] sm:$0xf]  }
   0xe   :  { %318 = vst [vmem:[#allocation1 + $0x38] sm:$0xff] %v665_v31  ;;  %v429_v44 = vld [vmem:[#allocation1 + $0x78] sm:$0xf]  }
   0xf   :  { %348 = vst [vmem:[#allocation1 + $0x98] sm:$0xff] %v669_v33  ;;  %v421_v43 = vld [vmem:[#allocation1 + $0x30] sm:$0xf]  }
  0x10   :  { %371 = vst [vmem:[#allocation0 + $0xc] sm:$0xff] %v664_v34   ;;  %v413_v42 = vld [vmem:[#allocation1 + $0xa0] sm:$0xf]  }
  0x11   :  { %387 = vst [vmem:[#allocation0 + $0x24] sm:$0xff] %v656_v29   ;;  %v405_v41 = vld [vmem:[#allocation1 + $0x80] sm:$0xf]  }
  0x12   :  { %v397_v40 = vld [vmem:[#allocation1 + $0x48] sm:$0xf]   ;;  %403 = vst [vmem:[#allocation0 + $0x3c] sm:$0xff] %v648_v23  }
  0x13   :  { %v389_v38 = vld [vmem:[#allocation1 + $0x10] sm:$0xf]   ;;  %399 = vst [vmem:[#allocation0 + $0x38] sm:$0xf] %v397_v40  }
  0x14   :  { %v381_v36 = vld [vmem:[#allocation1 + $0x88] sm:$0xf]   ;;  %391 = vst [vmem:[#allocation0 + $0x2c] sm:$0xf] %v389_v38  }
  0x15   :  { %v373_v37 = vld [vmem:[#allocation1 + $0x38] sm:$0xf]   ;;  %383 = vst [vmem:[#allocation0 + $0x20] sm:$0xf] %v381_v36  }
  0x16   :  { %375 = vst [vmem:[#allocation0 + $0x14] sm:$0xf] %v373_v37   ;;  %v365_v39 = vld [vmem:[#allocation1 + $0x98] sm:$0xf]  }
  0x17   :  { %367 = vst [vmem:[#allocation0 + $0x8] sm:$0xf] %v365_v39  }
  0x18   :  { %407 = vst [vmem:[#allocation0 + $0x44] sm:$0xf] %v405_v41  }
  0x19   :  { %415 = vst [vmem:[#allocation0 + $0x50] sm:$0xf] %v413_v42  }
  0x1a   :  { %419 = vst [vmem:[#allocation0 + $0x54] sm:$0xff] %v640_v17   ;;  %v506_v53 = vld [vmem:[#allocation0 + $0x38] sm:$0xff] }
  0x1b   :  { %423 = vst [vmem:[#allocation0 + $0x5c] sm:$0xf] %v421_v43   ;;  %v492_v50 = vld [vmem:[#allocation0 + $0x28] sm:$0xff]  ;;  %v688_v59 = vpack.c.bf16 %v506_v53, %v652_v26 }
  0x1c   :  { %431 = vst [vmem:[#allocation0 + $0x68] sm:$0xf] %v429_v44   ;;  %v485_v49 = vld [vmem:[#allocation0 + $0x20] sm:$0xff] }
  0x1d   :  { %435 = vst [vmem:[#allocation0 + $0x6c] sm:$0xff] %v632_v11   ;;  %v471_v48 = vld [vmem:[#allocation0 + $0x10] sm:$0xff]  ;;  %v683_v56 = vpack.c.bf16 %v492_v50, %v485_v49 }
  0x1e   :  { %v464_v46 = vld [vmem:[#allocation0 + $0x8] sm:$0xff]  ;;  %439 = vst [vmem:[#allocation0 + $0x74] sm:$0xf] %v437_v45   ;;  %v678_v54 = vpack.c.bf16 %v660_v32, %v471_v48 }
  0x1f   :  { %v673_v52 = vpack.c.bf16 %v464_v46, %v668_v35  ;;  %447 = vst [vmem:[#allocation0 + $0x80] sm:$0xf] %v445_v47   ;;  %v513_v55 = vld [vmem:[#allocation0 + $0x40] sm:$0xff] }
  0x20   :  { %451 = vst [vmem:[#allocation0 + $0x84] sm:$0xff] %v624_v5   ;;  %v693_v60 = vpack.c.bf16 %v644_v20, %v513_v55 }
  0x21   :  { %v527_v57 = vld [vmem:[#allocation0 + $0x50] sm:$0xff]  ;;  %455 = vst [vmem:[#allocation0 + $0x8c] sm:$0xf] %v453_v51  }
  0x22   :  { %v534_v58 = vld [vmem:[#allocation0 + $0x58] sm:$0xff]  ;;  %674 = vst [vmem:[%s840_s1] sm:$0xff] %v673_v52  }
  0x23   :  { %726 = vst [vmem:[%s840_s1 + $0x8] sm:$0xff] %v678_v54   ;;  %v698_v61 = vpack.c.bf16 %v534_v58, %v527_v57 }
  0x24   :  { %v548_v62 = vld [vmem:[#allocation0 + $0x68] sm:$0xff]  ;;  %727 = vst [vmem:[%s840_s1 + $0x10] sm:$0xff] %v683_v56  }
  0x25   :  { %v703_v63 = vpack.c.bf16 %v548_v62, %v636_v14  ;;  %v555_v0 = vld [vmem:[#allocation0 + $0x70] sm:$0xff]  ;;  %728 = vst [vmem:[%s840_s1 + $0x18] sm:$0xff] %v688_v59  }
  0x26   :  { %v708_v1 = vpack.c.bf16 %v628_v8, %v555_v0  ;;  %729 = vst [vmem:[%s840_s1 + $0x20] sm:$0xff] %v693_v60  }
  0x27   :  { %730 = vst [vmem:[%s840_s1 + $0x28] sm:$0xff] %v698_v61   ;;  %v569_v2 = vld [vmem:[#allocation0 + $0x80] sm:$0xff] }
  0x28   :  { %731 = vst [vmem:[%s840_s1 + $0x30] sm:$0xff] %v703_v63   ;;  %v576_v3 = vld [vmem:[#allocation0 + $0x88] sm:$0xff] }
  0x29   :  { %732 = vst [vmem:[%s840_s1 + $0x38] sm:$0xff] %v708_v1   ;;  %v713_v4 = vpack.c.bf16 %v576_v3, %v569_v2 }
  0x2b   :  { %733 = vst [vmem:[%s840_s1 + $0x40] sm:$0xff] %v713_v4  }

// kernel: domain_adaptor_theta_forward.1
= control target key start
LH: loop header
LB: loop body
LE: loop exit
PB: predicated region body
PF: predicated region fallthrough
CT: control target
= control target key end

     0   :  { %s1680_s12 = smov 64   ;;  %s1681_s15 = smov 127   ;;  %s2477_s1 = inlined_call_operand.vmem [shape: bf16[256,128], index: 1, kind: input, shape index: {}]   ;;  %s2478_s0 = inlined_call_operand.vmem [shape: bf16[144,256], index: 0, kind: input, shape index: {}]   ;;  %s2479_s3 = inlined_call_operand.vmem [shape: f32[24,128], index: 3, kind: input, shape index: {}]   ;;  %s2480_s2 = inlined_call_operand.vmem [shape: bf16[6,144,128], index: 2, kind: input, shape index: {}]   ;;  %s2481_s4 = inlined_call_operand.vmem [shape: f32[8,128], index: 4, kind: output, shape index: {}]  }
   0x1   :  { %v1365_v0 = vld [vmem:[%s2477_s1 + $0x38] sm:$0xff]  ;;  %v1364_v2 = vld [vmem:[%s2477_s1 + $0x30] sm:$0xff]  ;;  %v1363_v4 = vld [vmem:[%s2477_s1 + $0x28] sm:$0xff]  ;;  %s1682_s16 = smov 126   ;;  %s1683_s17 = smov 2  }
   0x2   :  { %v1373_v1 = vld [vmem:[%s2477_s1 + $0x78] sm:$0xff]  ;;  %257 = vmatpush.bf16.msra.mxu0 %v1365_v0  ;;  %v1372_v3 = vld [vmem:[%s2477_s1 + $0x70] sm:$0xff]  ;;  %1643 = vmatpush.bf16.msra.mxu2 %v1365_v0  ;;  %v1371_v5 = vld [vmem:[%s2477_s1 + $0x68] sm:$0xff]  ;;  %s1684_s18 = smov 4  }
   0x3   :  { %311 = vmatpush.bf16.msra.mxu1 %v1373_v1  ;;  %1651 = vmatpush.bf16.msra.mxu3 %v1373_v1  ;;  %v1362_v6 = vld [vmem:[%s2477_s1 + $0x20] sm:$0xff]  ;;  %v1361_v8 = vld [vmem:[%s2477_s1 + $0x18] sm:$0xff]  ;;  %v1360_v10 = vld [vmem:[%s2477_s1 + $0x10] sm:$0xff] }
   0x4   :  { %v1370_v7 = vld [vmem:[%s2477_s1 + $0x60] sm:$0xff]  ;;  %v1369_v9 = vld [vmem:[%s2477_s1 + $0x58] sm:$0xff]  ;;  %v1368_v11 = vld [vmem:[%s2477_s1 + $0x50] sm:$0xff] }
   0x5   :  { %v1359_v12 = vld [vmem:[%s2477_s1 + $0x8] sm:$0xff]  ;;  %v1358_v14 = vld [vmem:[%s2477_s1] sm:$0xff]  ;;  %v1350_v22 = vld [vmem:[%s2478_s0 + $0x54] sm:$0xf] }
   0x6   :  { %258 = vmatpush.bf16.msra.mxu0 %v1364_v2  ;;  %1644 = vmatpush.bf16.msra.mxu2 %v1364_v2  ;;  %v1367_v13 = vld [vmem:[%s2477_s1 + $0x48] sm:$0xff]  ;;  %v1366_v15 = vld [vmem:[%s2477_s1 + $0x40] sm:$0xff]  ;;  %v1158_v23 = vld [vmem:[%s2478_s0 + $0x58] sm:$0xf0] }
   0x7   :  { %312 = vmatpush.bf16.msra.mxu1 %v1372_v3  ;;  %1652 = vmatpush.bf16.msra.mxu3 %v1372_v3  ;;  %v1116_v16 = vld [vmem:[%s2478_s0] sm:$0xf]  ;;  %v1341_v17 = vld [vmem:[%s2478_s0 + $0x4] sm:$0xf0]  ;;  %v1340_v18 = vld [vmem:[%s2478_s0 + $0x4] sm:$0xf]  ;;  %v1161_v27 = vor.u32 %v1350_v22, %v1158_v23 }
   0x8   :  { %v1118_v19 = vld [vmem:[%s2478_s0 + $0x8] sm:$0xf0]  ;;  %v1148_v20 = vld [vmem:[%s2478_s0 + $0x40] sm:$0xf]  ;;  %v1349_v21 = vld [vmem:[%s2478_s0 + $0x44] sm:$0xf0]  ;;  %v1117_v24 = vor.u32 %v1341_v17, %v1116_v16 }
   0x9   :  { %v1121_v25 = vor.u32 %v1340_v18, %v1118_v19  ;;  %v1149_v26 = vor.u32 %v1349_v21, %v1148_v20  ;;  %v1124_v28 = vld [vmem:[%s2478_s0 + $0x10] sm:$0xf]  ;;  %v1343_v29 = vld [vmem:[%s2478_s0 + $0x14] sm:$0xf0]  ;;  %v1342_v30 = vld [vmem:[%s2478_s0 + $0x14] sm:$0xf] }
   0xa   :  { %259 = vmatpush.bf16.msra.mxu0 %v1363_v4  ;;  %1645 = vmatpush.bf16.msra.mxu2 %v1363_v4  ;;  %v1126_v31 = vld [vmem:[%s2478_s0 + $0x18] sm:$0xf0]  ;;  %v1156_v32 = vld [vmem:[%s2478_s0 + $0x50] sm:$0xf]  ;;  %v1351_v33 = vld [vmem:[%s2478_s0 + $0x54] sm:$0xf0]  ;;  %v1125_v36 = vor.u32 %v1343_v29, %v1124_v28 }
   0xb   :  { %313 = vmatpush.bf16.msra.mxu1 %v1371_v5  ;;  %1653 = vmatpush.bf16.msra.mxu3 %v1371_v5  ;;  %v1352_v34 = vld [vmem:[%s2478_s0 + $0x64] sm:$0xf]  ;;  %v1166_v35 = vld [vmem:[%s2478_s0 + $0x68] sm:$0xf0]  ;;  %v1129_v37 = vor.u32 %v1342_v30, %v1126_v31  ;;  %v1157_v38 = vor.u32 %v1351_v33, %v1156_v32  ;;  %v1132_v40 = vld [vmem:[%s2478_s0 + $0x20] sm:$0xf] }
   0xc   :  { %v1169_v39 = vor.u32 %v1352_v34, %v1166_v35  ;;  %v1345_v41 = vld [vmem:[%s2478_s0 + $0x24] sm:$0xf0]  ;;  %v1344_v42 = vld [vmem:[%s2478_s0 + $0x24] sm:$0xf]  ;;  %v1134_v43 = vld [vmem:[%s2478_s0 + $0x28] sm:$0xf0] }
   0xd   :  { %v1164_v44 = vld [vmem:[%s2478_s0 + $0x60] sm:$0xf]  ;;  %v1353_v45 = vld [vmem:[%s2478_s0 + $0x64] sm:$0xf0]  ;;  %v1354_v46 = vld [vmem:[%s2478_s0 + $0x74] sm:$0xf]  ;;  %v1133_v48 = vor.u32 %v1345_v41, %v1132_v40  ;;  %v1137_v49 = vor.u32 %v1344_v42, %v1134_v43 }
   0xe   :  { %260 = vmatpush.bf16.msra.mxu0 %v1362_v6  ;;  %1646 = vmatpush.bf16.msra.mxu2 %v1362_v6  ;;  %v1174_v47 = vld [vmem:[%s2478_s0 + $0x78] sm:$0xf0]  ;;  %v1165_v50 = vor.u32 %v1353_v45, %v1164_v44  ;;  %v1140_v52 = vld [vmem:[%s2478_s0 + $0x30] sm:$0xf]  ;;  %v1347_v53 = vld [vmem:[%s2478_s0 + $0x34] sm:$0xf0] }
   0xf   :  { %314 = vmatpush.bf16.msra.mxu1 %v1370_v7  ;;  %1654 = vmatpush.bf16.msra.mxu3 %v1370_v7  ;;  %v1177_v51 = vor.u32 %v1354_v46, %v1174_v47  ;;  %v1346_v54 = vld [vmem:[%s2478_s0 + $0x34] sm:$0xf]  ;;  %v1142_v55 = vld [vmem:[%s2478_s0 + $0x38] sm:$0xf0]  ;;  %v1172_v56 = vld [vmem:[%s2478_s0 + $0x70] sm:$0xf]  ;;  %v1141_v60 = vor.u32 %v1347_v53, %v1140_v52 }
  0x10   :  { %v1355_v57 = vld [vmem:[%s2478_s0 + $0x74] sm:$0xf0]  ;;  %v1356_v58 = vld [vmem:[%s2478_s0 + $0x84] sm:$0xf]  ;;  %v1182_v59 = vld [vmem:[%s2478_s0 + $0x88] sm:$0xf0]  ;;  %v1145_v61 = vor.u32 %v1346_v54, %v1142_v55 }
  0x11   :  { %v1173_v62 = vor.u32 %v1355_v57, %v1172_v56  ;;  %v1185_v63 = vor.u32 %v1356_v58, %v1182_v59  ;;  %v1348_v0 = vld [vmem:[%s2478_s0 + $0x44] sm:$0xf]  ;;  %v1150_v1 = vld [vmem:[%s2478_s0 + $0x48] sm:$0xf0]  ;;  %v1180_v2 = vld [vmem:[%s2478_s0 + $0x80] sm:$0xf] }
  0x12   :  { %261 = vmatpush.bf16.msra.mxu0 %v1361_v8  ;;  %1647 = vmatpush.bf16.msra.mxu2 %v1361_v8  ;;  %v1357_v3 = vld [vmem:[%s2478_s0 + $0x84] sm:$0xf0]  ;;  %v1153_v4 = vor.u32 %v1348_v0, %v1150_v1  ;;  %s1679_s0 = smov 96  }
  0x13   :  { %315 = vmatpush.bf16.msra.mxu1 %v1369_v9  ;;  %1655 = vmatpush.bf16.msra.mxu3 %v1369_v9  ;;  %v1181_v5 = vor.u32 %v1357_v3, %v1180_v2 }
  0x16   :  { %262 = vmatpush.bf16.msra.mxu0 %v1360_v10  ;;  %1648 = vmatpush.bf16.msra.mxu2 %v1360_v10 }
  0x17   :  { %316 = vmatpush.bf16.msra.mxu1 %v1368_v11  ;;  %1656 = vmatpush.bf16.msra.mxu3 %v1368_v11 }
  0x1a   :  { %263 = vmatpush.bf16.msra.mxu0 %v1359_v12  ;;  %1649 = vmatpush.bf16.msra.mxu2 %v1359_v12 }
  0x1b   :  { %317 = vmatpush.bf16.msra.mxu1 %v1367_v13  ;;  %1657 = vmatpush.bf16.msra.mxu3 %v1367_v13 }
  0x1e   :  { %264 = vmatpush.bf16.msra.mxu0 %v1358_v14  ;;  %1650 = vmatpush.bf16.msra.mxu2 %v1358_v14 }
  0x1f   :  { %318 = vmatpush.bf16.msra.mxu1 %v1366_v15  ;;  %1658 = vmatpush.bf16.msra.mxu3 %v1366_v15 }
  0x21   :  { %265 = vmatmul.bf16.vlgmr.msra.gmra.mxu0 %v1117_v24  ;;  %285 = vmatmul.bf16.vlgmr.msra.gmra.mxu2 %v1149_v26 }
  0x22   :  { %319 = vmatmul.bf16.vlgmr.msra.gmra.mxu1 %v1121_v25  ;;  %344 = vmatmul.bf16.vlgmr.msra.gmra.mxu3 %v1161_v27 }
  0x31   :  { %270 = vmatmul.bf16.gmra.mxu0 %v1125_v36  ;;  %290 = vmatmul.bf16.gmra.mxu2 %v1157_v38 }
  0x32   :  { %324 = vmatmul.bf16.gmra.mxu1 %v1129_v37  ;;  %349 = vmatmul.bf16.gmra.mxu3 %v1169_v39 }
  0x41   :  { %275 = vmatmul.bf16.gmra.mxu0 %v1133_v48  ;;  %295 = vmatmul.bf16.gmra.mxu2 %v1165_v50 }
  0x42   :  { %329 = vmatmul.bf16.gmra.mxu1 %v1137_v49  ;;  %354 = vmatmul.bf16.gmra.mxu3 %v1177_v51 }
  0x51   :  { %280 = vmatmul.bf16.gmra.mxu0 %v1141_v60  ;;  %300 = vmatmul.bf16.gmra.mxu2 %v1173_v62  ;;  %v1676_v62 = vmov 144.0  }
  0x52   :  { %334 = vmatmul.bf16.gmra.mxu1 %v1145_v61  ;;  %359 = vmatmul.bf16.gmra.mxu3 %v1185_v63  ;;  %1670 = vrcp.f32 %v1676_v62 }
  0x58   :  { %v1671_v3 = vpop.eup %1670 }
  0x59   :  { %vm393_vm0 = vweird.f32 %v1671_v3 }
  0x61   :  { %305 = vmatmul.bf16.gmra.mxu2 %v1181_v5 }
  0x62   :  { %339 = vmatmul.bf16.gmra.mxu1 %v1153_v4 }
  0x9e   :  { %v266_v6 = vpop.f32.mrf.mxu0 }
  0x9f   :  { %v320_v7 = vpop.f32.mrf.mxu1 }
  0xa0   :  { %v321_v34 = vadd.f32 %v320_v7, %v266_v6 }
  0xa4   :  { %v286_v8 = vpop.f32.mrf.mxu2 }
  0xa5   :  { %v345_v12 = vpop.f32.mrf.mxu3 }
  0xa6   :  { %v268_v9 = vpop.f32.mrf.mxu0 }
  0xa7   :  { %v322_v10 = vpop.f32.mrf.mxu1 }
  0xa8   :  { %v1866_v30 = vadd.f32 %v322_v10, %v268_v9  ;;  %v389_v10 = vmul.f32 144.0, %v1671_v3 }
  0xaa   :  { %v365_v36 = vadd.f32 %v1866_v30, %v321_v34 }
  0xac   :  { %v288_v11 = vpop.f32.mrf.mxu2 }
  0xad   :  { %v347_v18 = vpop.f32.mrf.mxu3 }
  0xae   :  { %v271_v13 = vpop.f32.mrf.mxu0 }
  0xaf   :  { %v325_v14 = vpop.f32.mrf.mxu1 }
  0xb0   :  { %v326_v35 = vadd.f32 %v325_v14, %v271_v13 }
  0xb2   :  { %v366_v38 = vadd.f32 %v365_v36, %v326_v35 }
  0xb4   :  { %v291_v15 = vpop.f32.mrf.mxu2 }
  0xb5   :  { %v350_v22 = vpop.f32.mrf.mxu3  ;;  %v346_v56 = vadd.f32 %v345_v12, %v291_v15  ;;  %v390_v15 = vsub.f32 1.0, %v389_v10 }
  0xb6   :  { %v273_v16 = vpop.f32.mrf.mxu0 }
  0xb7   :  { %v327_v17 = vpop.f32.mrf.mxu1 }
  0xb8   :  { %v328_v37 = vadd.f32 %v327_v17, %v273_v16 }
  0xba   :  { %v367_v40 = vadd.f32 %v366_v38, %v328_v37 }
  0xbc   :  { %v293_v19 = vpop.f32.mrf.mxu2 }
  0xbd   :  { %v352_v26 = vpop.f32.mrf.mxu3  ;;  %v348_v60 = vadd.f32 %v347_v18, %v293_v19  ;;  %v391_v18 = vmul.f32 %v1671_v3, %v390_v15 }
  0xbe   :  { %v276_v21 = vpop.f32.mrf.mxu0 }
  0xbf   :  { %v330_v20 = vpop.f32.mrf.mxu1 }
  0xc0   :  { %v331_v39 = vadd.f32 %v330_v20, %v276_v21  ;;  %v392_v21 = vadd.f32 %v1671_v3, %v391_v18 }
  0xc2   :  { %v368_v44 = vadd.f32 %v367_v40, %v331_v39 }
  0xc4   :  { %v296_v23 = vpop.f32.mrf.mxu2 }
  0xc5   :  { %v355_v31 = vpop.f32.mrf.mxu3  ;;  %v351_v63 = vadd.f32 %v350_v22, %v296_v23 }
  0xc6   :  { %v278_v25 = vpop.f32.mrf.mxu0 }
  0xc7   :  { %v332_v24 = vpop.f32.mrf.mxu1 }
  0xc8   :  { %v333_v41 = vadd.f32 %v332_v24, %v278_v25  ;;  %v394_v24 = vsel %vm393_vm0, %v1671_v3, %v392_v21 }
  0xca   :  { %v369_v48 = vadd.f32 %v368_v44, %v333_v41 }
  0xcc   :  { %v298_v27 = vpop.f32.mrf.mxu2 }
  0xcd   :  { %v357_v47 = vpop.f32.mrf.mxu3  ;;  %v353_v1 = vadd.f32 %v352_v26, %v298_v27 }
  0xce   :  { %v281_v29 = vpop.f32.mrf.mxu0 }
  0xcf   :  { %v335_v28 = vpop.f32.mrf.mxu1 }
  0xd0   :  { %v336_v45 = vadd.f32 %v335_v28, %v281_v29 }
  0xd2   :  { %v370_v50 = vadd.f32 %v369_v48, %v336_v45 }
  0xd4   :  { %v301_v32 = vpop.f32.mrf.mxu2 }
  0xd5   :  { %v360_v59 = vpop.f32.mrf.mxu3  ;;  %v356_v4 = vadd.f32 %v355_v31, %v301_v32 }
  0xd6   :  { %v283_v42 = vpop.f32.mrf.mxu0 }
  0xd7   :  { %v337_v33 = vpop.f32.mrf.mxu1 }
  0xd8   :  { %v338_v49 = vadd.f32 %v337_v33, %v283_v42 }
  0xda   :  { %v371_v52 = vadd.f32 %v370_v50, %v338_v49 }
  0xdc   :  { %v303_v46 = vpop.f32.mrf.mxu2 }
  0xdd   :  { %v358_v6 = vadd.f32 %v357_v47, %v303_v46  ;;  %v362_v9 = vpop.f32.mrf.mxu3 }
  0xdf   :  { %v340_v43 = vpop.f32.mrf.mxu1 }
  0xe0   :  { %v341_v51 = vadd.f32 %v340_v43, %v286_v8 }
  0xe2   :  { %v372_v54 = vadd.f32 %v371_v52, %v341_v51 }
  0xe4   :  { %v306_v58 = vpop.f32.mrf.mxu2 }
  0xe7   :  { %v342_v53 = vpop.f32.mrf.mxu1 }
  0xe8   :  { %v343_v55 = vadd.f32 %v342_v53, %v288_v11  ;;  %v361_v11 = vadd.f32 %v360_v59, %v306_v58 }
  0xea   :  { %v373_v57 = vadd.f32 %v372_v54, %v343_v55 }
  0xec   :  { %v374_v61 = vadd.f32 %v373_v57, %v346_v56  ;;  %v308_v8 = vpop.f32.mrf.mxu2 }
  0xed   :  { %v363_v14 = vadd.f32 %v362_v9, %v308_v8 }
  0xee   :  { %v375_v0 = vadd.f32 %v374_v61, %v348_v60 }
  0xf0   :  { %v376_v2 = vadd.f32 %v375_v0, %v351_v63 }
  0xf2   :  { %v377_v5 = vadd.f32 %v376_v2, %v353_v1 }
  0xf4   :  { %v378_v7 = vadd.f32 %v377_v5, %v356_v4 }
  0xf6   :  { %v379_v12 = vadd.f32 %v378_v7, %v358_v6 }
  0xf8   :  { %v380_v13 = vadd.f32 %v379_v12, %v361_v11 }
  0xfa   :  { %v381_v16 = vadd.f32 %v380_v13, %v363_v14 }
  0xfc   :  { %v382_v17 = vrot.slane %v381_v16, 4 }
  0xfe   :  { %v383_v19 = vadd.f32 %v382_v17, %v381_v16 }
 0x100   :  { %v384_v20 = vrot.slane %v383_v19, 2 }
 0x102   :  { %v385_v22 = vadd.f32 %v384_v20, %v383_v19 }
 0x104   :  { %v386_v23 = vrot.slane %v385_v22, 1 }
 0x106   :  { %v387_v25 = vadd.f32 %v386_v23, %v385_v22 }
 0x108   :  { %v395_v26 = vmul.f32 %v394_v24, %v387_v25 }
 0x10a   :  { %v1869_v27 = vsub.f32 %v321_v34, %v395_v26  ;;  %v1872_v28 = vsub.f32 %v1866_v30, %v395_v26  ;;  %v1874_v29 = vsub.f32 %v326_v35, %v395_v26  ;;  %v1880_v33 = vsub.f32 %v328_v37, %v395_v26 }
 0x10b   :  { %v1882_v36 = vsub.f32 %v331_v39, %v395_v26  ;;  %v1886_v40 = vsub.f32 %v333_v41, %v395_v26  ;;  %v1890_v42 = vsub.f32 %v336_v45, %v395_v26  ;;  %v1894_v37 = vsub.f32 %v338_v49, %v395_v26 }
 0x10c   :  { %v414_v31 = vmul.f32 %v1869_v27, %v1869_v27  ;;  %v415_v32 = vmul.f32 %v1872_v28, %v1872_v28  ;;  %v416_v38 = vmul.f32 %v1874_v29, %v1874_v29  ;;  %v417_v30 = vmul.f32 %v1880_v33, %v1880_v33 }
 0x10d   :  { %v418_v43 = vmul.f32 %v1882_v36, %v1882_v36  ;;  %v419_v39 = vmul.f32 %v1886_v40, %v1886_v40  ;;  %v1898_v47 = vsub.f32 %v341_v51, %v395_v26  ;;  %v420_v41 = vmul.f32 %v1890_v42, %v1890_v42 }
 0x10e   :  { %v432_v34 = vadd.f32 %v415_v32, %v414_v31  ;;  %v1902_v50 = vsub.f32 %v343_v55, %v395_v26  ;;  %v421_v45 = vmul.f32 %v1894_v37, %v1894_v37  ;;  %v1906_v53 = vsub.f32 %v346_v56, %v395_v26 }
 0x10f   :  { %v422_v49 = vmul.f32 %v1898_v47, %v1898_v47  ;;  %v1910_v57 = vsub.f32 %v348_v60, %v395_v26  ;;  %v1914_v59 = vsub.f32 %v351_v63, %v395_v26  ;;  %v1918_v62 = vsub.f32 %v353_v1, %v395_v26 }
 0x110   :  { %v433_v35 = vadd.f32 %v432_v34, %v416_v38  ;;  %v423_v51 = vmul.f32 %v1902_v50, %v1902_v50  ;;  %v424_v55 = vmul.f32 %v1906_v53, %v1906_v53  ;;  %v1922_v2 = vsub.f32 %v356_v4, %v395_v26 }
 0x111   :  { %v425_v56 = vmul.f32 %v1910_v57, %v1910_v57  ;;  %v426_v60 = vmul.f32 %v1914_v59, %v1914_v59  ;;  %v1926_v5 = vsub.f32 %v358_v6, %v395_v26  ;;  %v427_v63 = vmul.f32 %v1918_v62, %v1918_v62 }
 0x112   :  { %v434_v44 = vadd.f32 %v433_v35, %v417_v30  ;;  %v1930_v8 = vsub.f32 %v361_v11, %v395_v26  ;;  %v428_v1 = vmul.f32 %v1922_v2, %v1922_v2  ;;  %v1934_v10 = vsub.f32 %v363_v14, %v395_v26  ;;  %v1945_v35 = vld [vmem:[%s2480_s2] sm:$0xff]  }
 0x113   :  { %v429_v4 = vmul.f32 %v1926_v5, %v1926_v5  ;;  %v1677_v38 = vmov 0.0  }
 0x114   :  { %v435_v46 = vadd.f32 %v434_v44, %v418_v43  ;;  %v430_v6 = vmul.f32 %v1930_v8, %v1930_v8  ;;  %v431_v15 = vmul.f32 %v1934_v10, %v1934_v10  ;;  %577 = vst [vmem:[#allocation2] sm:$0xff] %v1677_v38  ;;  %v1955_v43 = vld [vmem:[%s2480_s2 + $0x10] sm:$0xff]   ;;  %v1960_v44 = vld [vmem:[%s2480_s2 + $0x18] sm:$0xff]  }
 0x116   :  { %v436_v48 = vadd.f32 %v435_v46, %v419_v39  ;;  %v1965_v39 = vld [vmem:[%s2480_s2 + $0x20] sm:$0xff]   ;;  %v1970_v46 = vld [vmem:[%s2480_s2 + $0x28] sm:$0xff]  }
 0x118   :  { %v437_v52 = vadd.f32 %v436_v48, %v420_v41  ;;  %v1376_v41 = vunpack.c.l.bf16 %v1945_v35  ;;  %v1377_v48 = vunpack.c.h.bf16 %v1945_v35 }
 0x11a   :  { %v438_v54 = vadd.f32 %v437_v52, %v421_v45 }
 0x11c   :  { %v439_v58 = vadd.f32 %v438_v54, %v422_v49  ;;  %v1979_v49 = vld [vmem:[%s2480_s2 + $0x30] sm:$0xff]   ;;  %v1984_v54 = vld [vmem:[%s2480_s2 + $0x38] sm:$0xff]  }
 0x11e   :  { %v440_v61 = vadd.f32 %v439_v58, %v423_v51  ;;  %v1384_v58 = vunpack.c.l.bf16 %v1955_v43 }
 0x120   :  { %v441_v0 = vadd.f32 %v440_v61, %v424_v55  ;;  %v1385_v55 = vunpack.c.h.bf16 %v1955_v43  ;;  %v1388_v61 = vunpack.c.l.bf16 %v1960_v44 }
 0x122   :  { %v442_v3 = vadd.f32 %v441_v0, %v425_v56  ;;  %v1992_v56 = vld [vmem:[%s2480_s2 + $0x40] sm:$0xff]   ;;  %v1389_v0 = vunpack.c.h.bf16 %v1960_v44 }
 0x124   :  { %v443_v7 = vadd.f32 %v442_v3, %v426_v60  ;;  %v1392_v60 = vunpack.c.l.bf16 %v1965_v39  ;;  %v1393_v3 = vunpack.c.h.bf16 %v1965_v39  ;;  %v2483_v39 = vunpack.c.l.bf16 %v1979_v49 }
 0x126   :  { %v444_v9 = vadd.f32 %v443_v7, %v427_v63  ;;  %v1396_v63 = vunpack.c.l.bf16 %v1970_v46  ;;  %v2001_v7 = vld [vmem:[%s2480_s2 + $0x48] sm:$0xff]  }
 0x128   :  { %v445_v12 = vadd.f32 %v444_v9, %v428_v1 }
 0x12a   :  { %v446_v13 = vadd.f32 %v445_v12, %v429_v4 }
 0x12c   :  { %v447_v16 = vadd.f32 %v446_v13, %v430_v6 }
 0x12e   :  { %v448_v11 = vadd.f32 %v447_v16, %v431_v15  ;;  %v1668_v15 = vld [vmem:[%s2479_s3] ss:$0 sm:$0xff] }
 0x130   :  { %v449_v17 = vrot.slane %v448_v11, 4 }
 0x132   :  { %v450_v18 = vadd.f32 %v449_v17, %v448_v11 }
 0x134   :  { %v451_v19 = vrot.slane %v450_v18, 2 }
 0x136   :  { %v452_v20 = vadd.f32 %v451_v19, %v450_v18  ;;  %v1412_v19 = vunpack.c.l.bf16 %v2001_v7 }
 0x138   :  { %v453_v21 = vrot.slane %v452_v20, 1 }
 0x13a   :  { %v454_v14 = vadd.f32 %v453_v21, %v452_v20  ;;  %v1413_v20 = vunpack.c.h.bf16 %v2001_v7  ;;  %v1600_v7 = vld [vmem:[%s2480_s2 + $0x58] sm:$0xff]  }
 0x13c   :  { %v455_v22 = vmul.f32 %v454_v14, %v394_v24  ;;  %v1950_v24 = vld [vmem:[%s2480_s2 + $0x8] sm:$0xff]  }
 0x13d   :  { %v1380_v45 = vunpack.c.l.bf16 %v1950_v24  ;;  %v1381_v52 = vunpack.c.h.bf16 %v1950_v24 }
 0x13e   :  { %v456_v23 = vadd.f32 1e-05, %v455_v22 }
 0x140   :  { %1672 = vrsqrt.f32 %v456_v23  ;;  %vm463_vm2 = vweird.f32 %v456_v23 }
 0x146   :  { %v1673_v25 = vpop.eup %1672 }
 0x147   :  { %v458_v26 = vmul.f32 %v1673_v25, %v456_v23  ;;  %vm464_vm1 = vweird.f32 %v1673_v25 }
 0x148   :  { %vm465_vm3 = vmor %vm463_vm2, %vm464_vm1 }
 0x149   :  { %v459_v31 = vmul.f32 %v1673_v25, %v458_v26 }
 0x14b   :  { %v460_v32 = vmul.f32 0.5, %v459_v31 }
 0x14d   :  { %v461_v34 = vsub.f32 1.5, %v460_v32 }
 0x14f   :  { %v462_v30 = vmul.f32 %v1673_v25, %v461_v34 }
 0x151   :  { %v466_v51 = vsel %vm465_vm3, %v1673_v25, %v462_v30 }
 0x152   :  { %v467_v6 = vmul.f32 %v466_v51, %v1869_v27  ;;  %v468_v13 = vmul.f32 %v466_v51, %v1872_v28  ;;  %v469_v17 = vmul.f32 %v466_v51, %v1874_v29  ;;  %v470_v27 = vmul.f32 %v466_v51, %v1880_v33 }
 0x153   :  { %v471_v28 = vmul.f32 %v466_v51, %v1882_v36  ;;  %v472_v21 = vmul.f32 %v466_v51, %v1886_v40  ;;  %v473_v14 = vmul.f32 %v466_v51, %v1890_v42  ;;  %v474_v22 = vmul.f32 %v466_v51, %v1894_v37  ;;  %v1669_v36 = vld [vmem:[%s2479_s3 + $0x1] ss:$0 sm:$0xff] }
 0x154   :  { %v475_v23 = vmul.f32 %v466_v51, %v1898_v47  ;;  %v476_v29 = vmul.f32 %v466_v51, %v1902_v50  ;;  %v477_v25 = vmul.f32 %v466_v51, %v1906_v53  ;;  %v478_v26 = vmul.f32 %v466_v51, %v1910_v57 }
 0x155   :  { %v479_v31 = vmul.f32 %v466_v51, %v1914_v59  ;;  %v486_v32 = vmul.f32 %v1668_v15, %v467_v6  ;;  %v487_v33 = vmul.f32 %v1668_v15, %v468_v13  ;;  %v480_v40 = vmul.f32 %v466_v51, %v1918_v62 }
 0x156   :  { %v481_v42 = vmul.f32 %v466_v51, %v1922_v2  ;;  %v482_v37 = vmul.f32 %v466_v51, %v1926_v5  ;;  %v483_v47 = vmul.f32 %v466_v51, %v1930_v8  ;;  %v484_v50 = vmul.f32 %v466_v51, %v1934_v10 }
 0x157   :  { %v488_v53 = vmul.f32 %v1668_v15, %v469_v17  ;;  %v489_v57 = vmul.f32 %v1668_v15, %v470_v27  ;;  %v490_v38 = vmul.f32 %v1668_v15, %v471_v28  ;;  %v491_v59 = vmul.f32 %v1668_v15, %v472_v21 }
 0x158   :  { %v492_v34 = vmul.f32 %v1668_v15, %v473_v14  ;;  %v493_v30 = vmul.f32 %v1668_v15, %v474_v22  ;;  %v494_v6 = vmul.f32 %v1668_v15, %v475_v23  ;;  %v495_v13 = vmul.f32 %v1668_v15, %v476_v29 }
 0x159   :  { %v496_v18 = vmul.f32 %v1668_v15, %v477_v25  ;;  %v505_v11 = vadd.f32 %v1669_v36, %v486_v32  ;;  %v506_v16 = vadd.f32 %v1669_v36, %v487_v33  ;;  %v497_v62 = vmul.f32 %v1668_v15, %v478_v26 }
 0x15a   :  { %v498_v12 = vmul.f32 %v1668_v15, %v479_v31  ;;  %v499_v2 = vmul.f32 %v1668_v15, %v480_v40  ;;  %v500_v4 = vmul.f32 %v1668_v15, %v481_v42  ;;  %v501_v5 = vmul.f32 %v1668_v15, %v482_v37 }
 0x15b   :  { %v502_v9 = vmul.f32 %v1668_v15, %v483_v47  ;;  %v503_v8 = vmul.f32 %v1668_v15, %v484_v50  ;;  %v507_v1 = vadd.f32 %v1669_v36, %v488_v53  ;;  %v508_v10 = vadd.f32 %v1669_v36, %v489_v57 }
 0x15c   :  { %v509_v51 = vadd.f32 %v1669_v36, %v490_v38  ;;  %v2036_v17 = vadd.f32 %v1669_v36, %v491_v59  ;;  %v2038_v27 = vadd.f32 %v1669_v36, %v492_v34  ;;  %v2040_v28 = vadd.f32 %v1669_v36, %v493_v30 }
 0x15d   :  { %v2042_v21 = vadd.f32 %v1669_v36, %v494_v6  ;;  %v541_v14 = vmul.f32 0.01, %v505_v11  ;;  %v542_v22 = vmul.f32 0.01, %v506_v16  ;;  %v2044_v23 = vadd.f32 %v1669_v36, %v495_v13 }
 0x15e   :  { %v2046_v29 = vadd.f32 %v1669_v36, %v496_v18  ;;  %vm523_vm4 = vcmp.gt.f32.partialorder %v505_v11, 0.0  ;;  %vm524_vm5 = vcmp.gt.f32.partialorder %v506_v16, 0.0  ;;  %v2048_v15 = vadd.f32 %v1669_v36, %v497_v62 }
 0x15f   :  { %v2050_v25 = vadd.f32 %v1669_v36, %v498_v12  ;;  %v2052_v26 = vadd.f32 %v1669_v36, %v499_v2  ;;  %v2054_v31 = vadd.f32 %v1669_v36, %v500_v4  ;;  %v2056_v32 = vadd.f32 %v1669_v36, %v501_v5  ;;  %v2075_v4 = vld [vmem:[%s2480_s2 + $0x50] sm:$0xff]  }
 0x160   :  { %v2058_v33 = vadd.f32 %v1669_v36, %v502_v9  ;;  %v2060_v40 = vadd.f32 %v1669_v36, %v503_v8  ;;  %vm525_vm6 = vcmp.gt.f32.partialorder %v507_v1, 0.0  ;;  %vm526_vm7 = vcmp.gt.f32.partialorder %v508_v10, 0.0 }
 0x161   :  { %v543_v18 = vmul.f32 0.01, %v507_v1  ;;  %v2062_v42 = vsel %vm523_vm4, %v505_v11, %v541_v14  ;;  %v2064_v37 = vsel %vm524_vm5, %v506_v16, %v542_v22  ;;  %vm527_vm8 = vcmp.gt.f32.partialorder %v509_v51, 0.0 }
 0x162   :  { %vm528_vm9 = vcmp.gt.f32.partialorder %v2036_v17, 0.0  ;;  %vm529_vm10 = vcmp.gt.f32.partialorder %v2038_v27, 0.0  ;;  %vm530_vm11 = vcmp.gt.f32.partialorder %v2040_v28, 0.0  ;;  %vm531_vm12 = vcmp.gt.f32.partialorder %v2042_v21, 0.0 }
 0x163   :  { %vm532_vm13 = vcmp.gt.f32.partialorder %v2044_v23, 0.0  ;;  %vm533_vm14 = vcmp.gt.f32.partialorder %v2046_v29, 0.0  ;;  %v544_v9 = vmul.f32 0.01, %v508_v10  ;;  %vm534_vm15 = vcmp.gt.f32.partialorder %v2048_v15, 0.0 }
 0x164   :  { %vm535_vm0 = vcmp.gt.f32.partialorder %v2050_v25, 0.0  ;;  %v614_v12 = vmul.f32 %v1376_v41, %v2062_v42  ;;  %v615_v16 = vmul.f32 %v1377_v48, %v2064_v37  ;;  %vm536_vm1 = vcmp.gt.f32.partialorder %v2052_v26, 0.0 }
 0x165   :  { %vm537_vm2 = vcmp.gt.f32.partialorder %v2054_v31, 0.0  ;;  %v545_v11 = vmul.f32 0.01, %v509_v51  ;;  %v2088_v36 = vsel %vm525_vm6, %v507_v1, %v543_v18  ;;  %vm538_vm3 = vcmp.gt.f32.partialorder %v2056_v32, 0.0 }
 0x166   :  { %vm539_vm4 = vcmp.gt.f32.partialorder %v2058_v33, 0.0  ;;  %vm540_vm5 = vcmp.gt.f32.partialorder %v2060_v40, 0.0  ;;  %v1416_v41 = vunpack.c.l.bf16 %v2075_v4  ;;  %v546_v47 = vmul.f32 0.01, %v2036_v17 }
 0x167   :  { %v547_v35 = vmul.f32 0.01, %v2038_v27  ;;  %v2097_v48 = vsel %vm526_vm7, %v508_v10, %v544_v9  ;;  %v1417_v50 = vunpack.c.h.bf16 %v2075_v4  ;;  %v548_v1 = vmul.f32 0.01, %v2040_v28 }
 0x168   :  { %v549_v53 = vmul.f32 0.01, %v2042_v21  ;;  %v616_v57 = vmul.f32 %v1380_v45, %v2088_v36  ;;  %v632_v38 = vadd.f32 %v615_v16, %v614_v12  ;;  %v550_v59 = vmul.f32 0.01, %v2044_v23 }
 0x169   :  { %v551_v34 = vmul.f32 0.01, %v2046_v29  ;;  %v552_v30 = vmul.f32 0.01, %v2048_v15  ;;  %v2109_v6 = vsel %vm527_vm8, %v509_v51, %v545_v11  ;;  %v553_v13 = vmul.f32 0.01, %v2050_v25 }
 0x16a   :  { %v554_v62 = vmul.f32 0.01, %v2052_v26  ;;  %v617_v2 = vmul.f32 %v1381_v52, %v2097_v48  ;;  %v633_v5 = vadd.f32 %v632_v38, %v616_v57  ;;  %v555_v45 = vmul.f32 0.01, %v2054_v31  ;;  %v1602_v38 = vld [vmem:[%s2480_s2 + $0x68] sm:$0xff]  }
 0x16b   :  { %v556_v8 = vmul.f32 0.01, %v2056_v32  ;;  %v557_v10 = vmul.f32 0.01, %v2058_v33  ;;  %v2122_v51 = vsel %vm528_vm9, %v2036_v17, %v546_v47  ;;  %v558_v14 = vmul.f32 0.01, %v2060_v40 }
 0x16c   :  { %v2128_v22 = vsel %vm529_vm10, %v2038_v27, %v547_v35  ;;  %v618_v24 = vmul.f32 %v1384_v58, %v2109_v6  ;;  %v634_v52 = vadd.f32 %v633_v5, %v617_v2  ;;  %v2136_v18 = vsel %vm530_vm11, %v2040_v28, %v548_v1  ;;  %v1607_v47 = vld [vmem:[%s2480_s2 + $0x90] sm:$0xff]  }
 0x16d   :  { %v2141_v17 = vsel %vm531_vm12, %v2042_v21, %v549_v53  ;;  %v693_v27 = vmul.f32 %v1412_v19, %v2062_v42  ;;  %v694_v9 = vmul.f32 %v1413_v20, %v2064_v37  ;;  %v2152_v58 = vsel %vm532_vm13, %v2044_v23, %v550_v59 }
 0x16e   :  { %v2157_v28 = vsel %vm533_vm14, %v2046_v29, %v551_v34  ;;  %v619_v21 = vmul.f32 %v1385_v55, %v2122_v51  ;;  %v635_v4 = vadd.f32 %v634_v52, %v618_v24  ;;  %v2168_v19 = vsel %vm534_vm15, %v2048_v15, %v552_v30  ;;  %v1603_v24 = vld [vmem:[%s2480_s2 + $0x70] sm:$0xff]  }
 0x16f   :  { %v2173_v20 = vsel %vm535_vm0, %v2050_v25, %v553_v13  ;;  %v2178_v43 = vsel %vm536_vm1, %v2052_v26, %v554_v62  ;;  %v2183_v55 = vsel %vm537_vm2, %v2054_v31, %v555_v45  ;;  %v2188_v23 = vsel %vm538_vm3, %v2056_v32, %v556_v8  ;;  %v1601_v32 = vld [vmem:[%s2480_s2 + $0x60] sm:$0xff]   ;;  %v1608_v8 = vld [vmem:[%s2480_s2 + $0x98] sm:$0xff]  }
 0x170   :  { %v2193_v29 = vsel %vm539_vm4, %v2058_v33, %v557_v10  ;;  %v620_v15 = vmul.f32 %v1388_v61, %v2128_v22  ;;  %v636_v25 = vadd.f32 %v635_v4, %v619_v21  ;;  %v2201_v26 = vsel %vm540_vm5, %v2060_v40, %v558_v14 }
 0x171   :  { %v1420_v31 = vunpack.c.l.bf16 %v1600_v7  ;;  %v695_v12 = vmul.f32 %v1416_v41, %v2088_v36  ;;  %v711_v16 = vadd.f32 %v694_v9, %v693_v27  ;;  %v621_v33 = vmul.f32 %v1389_v0, %v2136_v18 }
 0x172   :  { %v622_v61 = vmul.f32 %v1392_v60, %v2141_v17  ;;  %v623_v40 = vmul.f32 %v1393_v3, %v2152_v58  ;;  %v637_v11 = vadd.f32 %v636_v25, %v620_v15  ;;  %v624_v41 = vmul.f32 %v1396_v63, %v2157_v28  ;;  %v1605_v25 = vld [vmem:[%s2480_s2 + $0x80] sm:$0xff]  }
 0x173   :  { %v1421_v35 = vunpack.c.h.bf16 %v1600_v7  ;;  %v696_v44 = vmul.f32 %v1417_v50, %v2097_v48  ;;  %v712_v0 = vadd.f32 %v711_v16, %v695_v12  ;;  %v2482_v60 = vunpack.c.h.bf16 %v1970_v46  ;;  %v1604_v7 = vld [vmem:[%s2480_s2 + $0x78] sm:$0xff]  }
 0x174   :  { %v626_v3 = vmul.f32 %v2483_v39, %v2173_v20  ;;  %v638_v53 = vadd.f32 %v637_v11, %v621_v33  ;;  %v1424_v57 = vunpack.c.l.bf16 %v1601_v32  ;;  %v697_v63 = vmul.f32 %v1420_v31, %v2109_v6  ;;  %v1609_v11 = vld [vmem:[%s2480_s2 + $0xa0] sm:$0xff]  }
 0x175   :  { %v625_v1 = vmul.f32 %v2482_v60, %v2168_v19  ;;  %v713_v59 = vadd.f32 %v712_v0, %v696_v44  ;;  %v1448_v34 = vunpack.c.l.bf16 %v1607_v47  ;;  %v1449_v50 = vunpack.c.h.bf16 %v1607_v47 }
 0x176   :  { %v2484_v30 = vunpack.c.h.bf16 %v1979_v49  ;;  %v2485_v13 = vunpack.c.l.bf16 %v1984_v54  ;;  %v2486_v2 = vunpack.c.h.bf16 %v1984_v54  ;;  %v639_v45 = vadd.f32 %v638_v53, %v622_v61 }
 0x177   :  { %v2487_v10 = vunpack.c.l.bf16 %v1992_v56  ;;  %v1425_v49 = vunpack.c.h.bf16 %v1601_v32  ;;  %v698_v52 = vmul.f32 %v1421_v35, %v2122_v51  ;;  %v714_v54 = vadd.f32 %v713_v59, %v697_v63  ;;  %v1606_v35 = vld [vmem:[%s2480_s2 + $0x88] sm:$0xff]  }
 0x178   :  { %v627_v46 = vmul.f32 %v2484_v30, %v2178_v43  ;;  %v628_v62 = vmul.f32 %v2485_v13, %v2183_v55  ;;  %v2242_v5 = vmul.f32 %v2486_v2, %v2188_v23  ;;  %v2488_v27 = vunpack.c.h.bf16 %v1992_v56 }
 0x179   :  { %v2250_v14 = vmul.f32 %v2487_v10, %v2193_v29  ;;  %v640_v21 = vadd.f32 %v639_v45, %v623_v40  ;;  %v1428_v4 = vunpack.c.l.bf16 %v1602_v38  ;;  %v699_v15 = vmul.f32 %v1424_v57, %v2128_v22  ;;  %v1610_v45 = vld [vmem:[%s2480_s2 + $0xa8] sm:$0xff]  }
 0x17a   :  { %v2259_v9 = vmul.f32 %v2488_v27, %v2201_v26  ;;  %v715_v31 = vadd.f32 %v714_v54, %v698_v52  ;;  %v1452_v32 = vunpack.c.l.bf16 %v1608_v8  ;;  %v772_v12 = vmul.f32 %v1448_v34, %v2062_v42 }
 0x17b   :  { %v773_v56 = vmul.f32 %v1449_v50, %v2064_v37  ;;  %v641_v16 = vadd.f32 %v640_v21, %v624_v41  ;;  %v1429_v33 = vunpack.c.h.bf16 %v1602_v38  ;;  %v1432_v61 = vunpack.c.l.bf16 %v1603_v24 }
 0x17c   :  { %v1433_v40 = vunpack.c.h.bf16 %v1603_v24  ;;  %v1436_v47 = vunpack.c.l.bf16 %v1604_v7  ;;  %v700_v44 = vmul.f32 %v1425_v49, %v2136_v18  ;;  %v716_v0 = vadd.f32 %v715_v31, %v699_v15  ;;  %v1616_v15 = vld [vmem:[%s2480_s2 + $0xd8] sm:$0xff]  }
 0x17d   :  { %v1453_v60 = vunpack.c.h.bf16 %v1608_v8  ;;  %v642_v39 = vadd.f32 %v641_v16, %v625_v1  ;;  %v1437_v53 = vunpack.c.h.bf16 %v1604_v7  ;;  %v1440_v57 = vunpack.c.l.bf16 %v1605_v25 }
 0x17e   :  { %v701_v41 = vmul.f32 %v1428_v4, %v2141_v17  ;;  %v717_v38 = vadd.f32 %v716_v0, %v700_v44  ;;  %v1456_v63 = vunpack.c.l.bf16 %v1609_v11  ;;  %v774_v59 = vmul.f32 %v1452_v32, %v2088_v36 }
 0x17f   :  { %v790_v34 = vadd.f32 %v773_v56, %v772_v12  ;;  %v643_v50 = vadd.f32 %v642_v39, %v626_v3  ;;  %v1441_v30 = vunpack.c.h.bf16 %v1605_v25  ;;  %v1444_v13 = vunpack.c.l.bf16 %v1606_v35  ;;  %v1611_v12 = vld [vmem:[%s2480_s2 + $0xb0] sm:$0xff]  }
 0x180   :  { %v702_v2 = vmul.f32 %v1429_v33, %v2152_v58  ;;  %v718_v8 = vadd.f32 %v717_v38, %v701_v41  ;;  %v1457_v1 = vunpack.c.h.bf16 %v1609_v11  ;;  %v775_v10 = vmul.f32 %v1453_v60, %v2097_v48 }
 0x181   :  { %v791_v49 = vadd.f32 %v790_v34, %v774_v59  ;;  %v644_v24 = vadd.f32 %v643_v50, %v627_v46  ;;  %v1445_v52 = vunpack.c.h.bf16 %v1606_v35  ;;  %v703_v54 = vmul.f32 %v1432_v61, %v2157_v28  ;;  %v1613_v34 = vld [vmem:[%s2480_s2 + $0xc0] sm:$0xff]  }
 0x182   :  { %v704_v27 = vmul.f32 %v1433_v40, %v2168_v19  ;;  %v719_v3 = vadd.f32 %v718_v8, %v702_v2  ;;  %v1460_v21 = vunpack.c.l.bf16 %v1610_v45  ;;  %v776_v4 = vmul.f32 %v1456_v63, %v2109_v6 }
 0x183   :  { %v792_v7 = vadd.f32 %v791_v49, %v775_v10  ;;  %v645_v25 = vadd.f32 %v644_v24, %v628_v62  ;;  %v705_v31 = vmul.f32 %v1436_v47, %v2173_v20  ;;  %v706_v32 = vmul.f32 %v1437_v53, %v2178_v43  ;;  %v1612_v62 = vld [vmem:[%s2480_s2 + $0xb8] sm:$0xff]   ;;  %v1617_v53 = vld [vmem:[%s2480_s2 + $0xe0] sm:$0xff]  }
 0x184   :  { %v707_v46 = vmul.f32 %v1440_v57, %v2183_v55  ;;  %v720_v56 = vadd.f32 %v719_v3, %v703_v54  ;;  %v1461_v16 = vunpack.c.h.bf16 %v1610_v45  ;;  %v777_v33 = vmul.f32 %v1457_v1, %v2122_v51 }
 0x185   :  { %v793_v61 = vadd.f32 %v792_v7, %v776_v4  ;;  %v646_v40 = vadd.f32 %v645_v25, %v2242_v5  ;;  %v708_v11 = vmul.f32 %v1441_v30, %v2188_v23  ;;  %v1484_v47 = vunpack.c.l.bf16 %v1616_v15 }
 0x186   :  { %v1485_v35 = vunpack.c.h.bf16 %v1616_v15  ;;  %v721_v44 = vadd.f32 %v720_v56, %v704_v27  ;;  %v1464_v0 = vunpack.c.l.bf16 %v1611_v12  ;;  %v778_v60 = vmul.f32 %v1460_v21, %v2128_v22 }
 0x187   :  { %v794_v39 = vadd.f32 %v793_v61, %v777_v33  ;;  %v647_v57 = vadd.f32 %v646_v40, %v2250_v14  ;;  %v709_v5 = vmul.f32 %v1444_v13, %v2193_v29  ;;  %v710_v41 = vmul.f32 %v1445_v52, %v2201_v26  ;;  %v2317_v14 = vld [vmem:[%s2480_s2 + $0xc8] sm:$0xff]  }
 0x188   :  { %v1465_v38 = vunpack.c.h.bf16 %v1611_v12  ;;  %v722_v63 = vadd.f32 %v721_v44, %v705_v31  ;;  %v1468_v59 = vunpack.c.l.bf16 %v1612_v62  ;;  %v779_v50 = vmul.f32 %v1461_v16, %v2136_v18  ;;  %v1618_v52 = vld [vmem:[%s2480_s2 + $0xe8] sm:$0xff]  }
 0x189   :  { %v795_v30 = vadd.f32 %v794_v39, %v778_v60  ;;  %v648_v2 = vadd.f32 %v647_v57, %v2259_v9  ;;  %v1488_v13 = vunpack.c.l.bf16 %v1617_v53  ;;  %v851_v45 = vmul.f32 %v1484_v47, %v2062_v42 }
 0x18a   :  { %v852_v8 = vmul.f32 %v1485_v35, %v2064_v37  ;;  %v723_v1 = vadd.f32 %v722_v63, %v706_v32  ;;  %v1469_v10 = vunpack.c.h.bf16 %v1612_v62  ;;  %v780_v49 = vmul.f32 %v1464_v0, %v2141_v17  ;;  %v1619_v32 = vld [vmem:[%s2480_s2 + $0xf0] sm:$0xff]  }
 0x18b   :  { %v796_v24 = vadd.f32 %v795_v30, %v779_v50  ;;  %v649_v9 = vrot.slane %v648_v2, 4  ;;  %v1472_v54 = vunpack.c.l.bf16 %v1613_v34  ;;  %v1473_v27 = vunpack.c.h.bf16 %v1613_v34 }
 0x18c   :  { %v1489_v3 = vunpack.c.h.bf16 %v1617_v53  ;;  %v724_v21 = vadd.f32 %v723_v1, %v707_v46  ;;  %v1476_v4 = vunpack.c.l.bf16 %v2317_v14  ;;  %v781_v7 = vmul.f32 %v1465_v38, %v2152_v58  ;;  %v1615_v46 = vld [vmem:[%s2480_s2 + $0xd0] sm:$0xff]   ;;  %v1620_v38 = vld [vmem:[%s2480_s2 + $0xf8] sm:$0xff]  }
 0x18d   :  { %v797_v15 = vadd.f32 %v796_v24, %v780_v49  ;;  %v650_v25 = vadd.f32 %v649_v9, %v648_v2  ;;  %v1492_v31 = vunpack.c.l.bf16 %v1618_v52  ;;  %v853_v12 = vmul.f32 %v1488_v13, %v2088_v36 }
 0x18e   :  { %v869_v56 = vadd.f32 %v852_v8, %v851_v45  ;;  %v725_v16 = vadd.f32 %v724_v21, %v708_v11  ;;  %v1477_v33 = vunpack.c.h.bf16 %v2317_v14  ;;  %v782_v61 = vmul.f32 %v1468_v59, %v2157_v28 }
 0x18f   :  { %v798_v40 = vadd.f32 %v797_v15, %v781_v7  ;;  %v651_v62 = vrot.slane %v650_v25, 2  ;;  %v1493_v47 = vunpack.c.h.bf16 %v1618_v52  ;;  %v854_v35 = vmul.f32 %v1489_v3, %v2097_v48  ;;  %v1621_v52 = vld [vmem:[%s2480_s2 + $0x100] sm:$0xff]  }
 0x190   :  { %v870_v44 = vadd.f32 %v869_v56, %v853_v12  ;;  %v726_v0 = vadd.f32 %v725_v16, %v709_v5  ;;  %v783_v60 = vmul.f32 %v1469_v10, %v2168_v19  ;;  %v1496_v53 = vunpack.c.l.bf16 %v1619_v32  ;;  %v1625_v5 = vld [vmem:[%s2480_s2 + $0x120] sm:$0xff]  }
 0x191   :  { %v799_v39 = vadd.f32 %v798_v40, %v782_v61  ;;  %v652_v11 = vadd.f32 %v651_v62, %v650_v25  ;;  %v1480_v57 = vunpack.c.l.bf16 %v1615_v46  ;;  %v855_v63 = vmul.f32 %v1492_v31, %v2109_v6  ;;  %v1626_v25 = vld [vmem:[%s2480_s2 + $0x128] sm:$0xff]  }
 0x192   :  { %v871_v59 = vadd.f32 %v870_v44, %v854_v35  ;;  %v727_v34 = vadd.f32 %v726_v0, %v710_v41  ;;  %v784_v50 = vmul.f32 %v1472_v54, %v2173_v20  ;;  %v785_v30 = vmul.f32 %v1473_v27, %v2178_v43 }
 0x193   :  { %v800_v2 = vadd.f32 %v799_v39, %v783_v60  ;;  %v653_v14 = vrot.slane %v652_v11, 1  ;;  %v1497_v13 = vunpack.c.h.bf16 %v1619_v32  ;;  %v856_v45 = vmul.f32 %v1493_v47, %v2122_v51 }
 0x194   :  { %v872_v8 = vadd.f32 %v871_v59, %v855_v63  ;;  %v728_v1 = vrot.slane %v727_v34, 4  ;;  %v1500_v49 = vunpack.c.l.bf16 %v1620_v38  ;;  %v857_v24 = vmul.f32 %v1496_v53, %v2128_v22  ;;  %v1627_v53 = vld [vmem:[%s2480_s2 + $0x130] sm:$0xff]  }
 0x195   :  { %v801_v10 = vadd.f32 %v800_v2, %v784_v50  ;;  %v654_v41 = vadd.f32 %v653_v14, %v652_v11  ;;  %v1520_v54 = vunpack.c.l.bf16 %v1625_v5  ;;  %v1521_v27 = vunpack.c.h.bf16 %v1625_v5 }
 0x196   :  { %v873_v9 = vadd.f32 %v872_v8, %v856_v45  ;;  %v729_v3 = vadd.f32 %v728_v1, %v727_v34  ;;  %v1481_v21 = vunpack.c.h.bf16 %v1615_v46  ;;  %v786_v7 = vmul.f32 %v1476_v4, %v2183_v55  ;;  %v1622_v4 = vld [vmem:[%s2480_s2 + $0x108] sm:$0xff]  }
 0x197   :  { %v802_v15 = vadd.f32 %v801_v10, %v785_v30  ;;  %655 = vst [vmem:[#allocation2] sm:$0x1] %v654_v41  ;;  %v787_v31 = vmul.f32 %v1477_v33, %v2188_v23  ;;  %v1501_v32 = vunpack.c.h.bf16 %v1620_v38  ;;  %v858_v12 = vmul.f32 %v1497_v13, %v2136_v18  ;;  %v1624_v41 = vld [vmem:[%s2480_s2 + $0x118] sm:$0xff]  }
 0x198   :  { %v874_v56 = vadd.f32 %v873_v9, %v857_v24  ;;  %v730_v16 = vrot.slane %v729_v3, 2  ;;  %v1504_v40 = vunpack.c.l.bf16 %v1621_v52  ;;  %v859_v62 = vmul.f32 %v1500_v49, %v2141_v17  ;;  %v1628_v24 = vld [vmem:[%s2480_s2 + $0x138] sm:$0xff]  }
 0x199   :  { %v803_v61 = vadd.f32 %v802_v15, %v786_v7  ;;  %v1524_v47 = vunpack.c.l.bf16 %v1626_v25  ;;  %v930_v35 = vmul.f32 %v1520_v54, %v2062_v42  ;;  %v931_v44 = vmul.f32 %v1521_v27, %v2064_v37 }
 0x19a   :  { %v875_v46 = vadd.f32 %v874_v56, %v858_v12  ;;  %v731_v33 = vadd.f32 %v730_v16, %v729_v3  ;;  %v788_v0 = vmul.f32 %v1480_v57, %v2193_v29  ;;  %v1505_v39 = vunpack.c.h.bf16 %v1621_v52  ;;  %v1623_v57 = vld [vmem:[%s2480_s2 + $0x110] sm:$0xff]   ;;  %v1634_v12 = vld [vmem:[%s2480_s2 + $0x168] sm:$0xff]  }
 0x19b   :  { %v804_v60 = vadd.f32 %v803_v61, %v787_v31  ;;  %v789_v11 = vmul.f32 %v1481_v21, %v2201_v26  ;;  %v860_v38 = vmul.f32 %v1501_v32, %v2152_v58  ;;  %v1525_v59 = vunpack.c.h.bf16 %v1626_v25 }
 0x19c   :  { %v876_v63 = vadd.f32 %v875_v46, %v859_v62  ;;  %v732_v34 = vrot.slane %v731_v33, 1  ;;  %v1508_v30 = vunpack.c.l.bf16 %v1622_v4  ;;  %v861_v2 = vmul.f32 %v1504_v40, %v2157_v28  ;;  %v1629_v62 = vld [vmem:[%s2480_s2 + $0x140] sm:$0xff]  }
 0x19d   :  { %v805_v50 = vadd.f32 %v804_v60, %v788_v0  ;;  %v1528_v14 = vunpack.c.l.bf16 %v1627_v53  ;;  %v932_v13 = vmul.f32 %v1524_v47, %v2088_v36  ;;  %v948_v45 = vadd.f32 %v931_v44, %v930_v35 }
 0x19e   :  { %v877_v5 = vadd.f32 %v876_v63, %v860_v38  ;;  %v733_v8 = vadd.f32 %v732_v34, %v731_v33  ;;  %v1509_v10 = vunpack.c.h.bf16 %v1622_v4  ;;  %v862_v49 = vmul.f32 %v1505_v39, %v2168_v19  ;;  %v1635_v63 = vld [vmem:[%s2480_s2 + $0x170] sm:$0xff]  }
 0x19f   :  { %v806_v1 = vadd.f32 %v805_v50, %v789_v11  ;;  %v1529_v9 = vunpack.c.h.bf16 %v1627_v53  ;;  %v933_v54 = vmul.f32 %v1525_v59, %v2097_v48  ;;  %v949_v27 = vadd.f32 %v948_v45, %v932_v13 }
 0x1a0   :  { %v878_v52 = vadd.f32 %v877_v5, %v861_v2  ;;  %734 = vst [vmem:[#allocation2 + $0x1] sm:$0x1] %v733_v8  ;;  %v1512_v21 = vunpack.c.l.bf16 %v1623_v57  ;;  %v863_v7 = vmul.f32 %v1508_v30, %v2173_v20  ;;  %v1532_v25 = vunpack.c.l.bf16 %v1628_v24  ;;  %v1630_v2 = vld [vmem:[%s2480_s2 + $0x148] sm:$0xff]  }
 0x1a1   :  { %v807_v3 = vrot.slane %v806_v1, 4  ;;  %v934_v31 = vmul.f32 %v1528_v14, %v2109_v6  ;;  %v950_v32 = vadd.f32 %v949_v27, %v933_v54  ;;  %v1513_v16 = vunpack.c.h.bf16 %v1623_v57 }
 0x1a2   :  { %v879_v15 = vadd.f32 %v878_v52, %v862_v49  ;;  %v1516_v61 = vunpack.c.l.bf16 %v1624_v41  ;;  %v864_v40 = vmul.f32 %v1509_v10, %v2178_v43  ;;  %v1533_v46 = vunpack.c.h.bf16 %v1628_v24 }
 0x1a3   :  { %v808_v56 = vadd.f32 %v807_v3, %v806_v1  ;;  %v935_v47 = vmul.f32 %v1529_v9, %v2122_v51  ;;  %v951_v35 = vadd.f32 %v950_v32, %v934_v31  ;;  %v865_v33 = vmul.f32 %v1512_v21, %v2183_v55  ;;  %v1636_v9 = vld [vmem:[%s2480_s2 + $0x178] sm:$0xff]   ;;  %v1631_v3 = vld [vmem:[%s2480_s2 + $0x150] sm:$0xff]  }
 0x1a4   :  { %v880_v4 = vadd.f32 %v879_v15, %v863_v7  ;;  %v1556_v0 = vunpack.c.l.bf16 %v1634_v12  ;;  %v1557_v60 = vunpack.c.h.bf16 %v1634_v12  ;;  %v1536_v53 = vunpack.c.l.bf16 %v1629_v62 }
 0x1a5   :  { %v809_v44 = vrot.slane %v808_v56, 2  ;;  %v936_v11 = vmul.f32 %v1532_v25, %v2128_v22  ;;  %v952_v38 = vadd.f32 %v951_v35, %v935_v47  ;;  %v1517_v34 = vunpack.c.h.bf16 %v1624_v41 }
 0x1a6   :  { %v881_v39 = vadd.f32 %v880_v4, %v864_v40  ;;  %v866_v50 = vmul.f32 %v1513_v16, %v2188_v23  ;;  %v867_v30 = vmul.f32 %v1516_v61, %v2193_v29  ;;  %v1537_v5 = vunpack.c.h.bf16 %v1629_v62  ;;  %v1637_v40 = vld [vmem:[%s2480_s2 + $0x180] sm:$0xff]   ;;  %v1632_v62 = vld [vmem:[%s2480_s2 + $0x158] sm:$0xff]  }
 0x1a7   :  { %v810_v59 = vadd.f32 %v809_v44, %v808_v56  ;;  %v937_v14 = vmul.f32 %v1533_v46, %v2136_v18  ;;  %v953_v13 = vadd.f32 %v952_v38, %v936_v11  ;;  %v1560_v8 = vunpack.c.l.bf16 %v1635_v63 }
 0x1a8   :  { %v882_v57 = vadd.f32 %v881_v39, %v865_v33  ;;  %v1009_v1 = vmul.f32 %v1556_v0, %v2062_v42  ;;  %v1010_v10 = vmul.f32 %v1557_v60, %v2064_v37  ;;  %v1540_v24 = vunpack.c.l.bf16 %v1630_v2 }
 0x1a9   :  { %v811_v45 = vrot.slane %v810_v59, 1  ;;  %v938_v41 = vmul.f32 %v1536_v53, %v2141_v17  ;;  %v954_v52 = vadd.f32 %v953_v13, %v937_v14  ;;  %v868_v27 = vmul.f32 %v1517_v34, %v2201_v26 }
 0x1aa   :  { %v883_v49 = vadd.f32 %v882_v57, %v866_v50  ;;  %v1561_v21 = vunpack.c.h.bf16 %v1635_v63  ;;  %v1541_v7 = vunpack.c.h.bf16 %v1630_v2  ;;  %v939_v37 = vmul.f32 %v1537_v5, %v2152_v58 }
 0x1ab   :  { %v812_v54 = vadd.f32 %v811_v45, %v810_v59  ;;  %v955_v15 = vadd.f32 %v954_v52, %v938_v41  ;;  %v1564_v25 = vunpack.c.l.bf16 %v1636_v9  ;;  %v1011_v31 = vmul.f32 %v1560_v8, %v2088_v36  ;;  %v1638_v59 = vld [vmem:[%s2480_s2 + $0x188] sm:$0xff]  }
 0x1ac   :  { %v884_v42 = vadd.f32 %v883_v49, %v867_v30  ;;  %v1027_v32 = vadd.f32 %v1010_v10, %v1009_v1  ;;  %v1544_v56 = vunpack.c.l.bf16 %v1631_v3  ;;  %v940_v16 = vmul.f32 %v1540_v24, %v2157_v28  ;;  %v1639_v24 = vld [vmem:[%s2480_s2 + $0x190] sm:$0xff]  }
 0x1ad   :  { %813 = vst [vmem:[#allocation2 + $0x2] sm:$0x1] %v812_v54  ;;  %v956_v61 = vadd.f32 %v955_v15, %v939_v37  ;;  %v1565_v4 = vunpack.c.h.bf16 %v1636_v9  ;;  %v1012_v46 = vmul.f32 %v1561_v21, %v2097_v48  ;;  %v1545_v36 = vunpack.c.h.bf16 %v1631_v3  ;;  %v1633_v48 = vld [vmem:[%s2480_s2 + $0x160] sm:$0xff]  }
 0x1ae   :  { %v885_v12 = vadd.f32 %v884_v42, %v868_v27  ;;  %v1028_v47 = vadd.f32 %v1027_v32, %v1011_v31  ;;  %v941_v44 = vmul.f32 %v1541_v7, %v2168_v19  ;;  %v1568_v0 = vunpack.c.l.bf16 %v1637_v40 }
 0x1af   :  { %v957_v33 = vadd.f32 %v956_v61, %v940_v16  ;;  %v1013_v60 = vmul.f32 %v1564_v25, %v2109_v6  ;;  %v1548_v11 = vunpack.c.l.bf16 %v1632_v62  ;;  %v942_v38 = vmul.f32 %v1544_v56, %v2173_v20  ;;  %v1640_v25 = vld [vmem:[%s2480_s2 + $0x198] sm:$0xff]  }
 0x1b0   :  { %v886_v35 = vrot.slane %v885_v12, 4  ;;  %v1029_v39 = vadd.f32 %v1028_v47, %v1012_v46  ;;  %v1569_v34 = vunpack.c.h.bf16 %v1637_v40  ;;  %v1014_v50 = vmul.f32 %v1565_v4, %v2122_v51 }
 0x1b1   :  { %v958_v63 = vadd.f32 %v957_v33, %v941_v44  ;;  %v1549_v6 = vunpack.c.h.bf16 %v1632_v62  ;;  %v943_v57 = vmul.f32 %v1545_v36, %v2178_v43  ;;  %v1572_v14 = vunpack.c.l.bf16 %v1638_v59  ;;  %v1641_v62 = vld [vmem:[%s2480_s2 + $0x1a0] sm:$0xff]  }
 0x1b2   :  { %v887_v53 = vadd.f32 %v886_v35, %v885_v12  ;;  %v1030_v30 = vadd.f32 %v1029_v39, %v1013_v60  ;;  %v1015_v13 = vmul.f32 %v1568_v0, %v2128_v22  ;;  %v1552_v1 = vunpack.c.l.bf16 %v1633_v48 }
 0x1b3   :  { %v959_v5 = vadd.f32 %v958_v63, %v942_v38  ;;  %v944_v10 = vmul.f32 %v1548_v11, %v2183_v55  ;;  %v1573_v51 = vunpack.c.h.bf16 %v1638_v59  ;;  %v1016_v41 = vmul.f32 %v1569_v34, %v2136_v18 }
 0x1b4   :  { %v888_v2 = vrot.slane %v887_v53, 2  ;;  %v1031_v45 = vadd.f32 %v1030_v30, %v1014_v50  ;;  %v1553_v54 = vunpack.c.h.bf16 %v1633_v48  ;;  %v945_v27 = vmul.f32 %v1549_v6, %v2188_v23 }
 0x1b5   :  { %v960_v49 = vadd.f32 %v959_v5, %v943_v57  ;;  %v1576_v22 = vunpack.c.l.bf16 %v1639_v24  ;;  %v1017_v21 = vmul.f32 %v1572_v14, %v2141_v17  ;;  %v946_v37 = vmul.f32 %v1552_v1, %v2193_v29 }
 0x1b6   :  { %v889_v8 = vadd.f32 %v888_v2, %v887_v53  ;;  %v1032_v52 = vadd.f32 %v1031_v45, %v1015_v13  ;;  %v1577_v31 = vunpack.c.h.bf16 %v1639_v24  ;;  %v1018_v18 = vmul.f32 %v1573_v51, %v2152_v58 }
 0x1b7   :  { %v961_v3 = vadd.f32 %v960_v49, %v944_v10  ;;  %v947_v12 = vmul.f32 %v1553_v54, %v2201_v26  ;;  %v1580_v16 = vunpack.c.l.bf16 %v1640_v25  ;;  %v1019_v17 = vmul.f32 %v1576_v22, %v2157_v28  ;;  %v1642_v28 = vld [vmem:[%s2480_s2 + $0x1a8] sm:$0xff]   ;;  %s1678_s2 = smov 32  }
 0x1b8   :  { %v890_v9 = vrot.slane %v889_v8, 1  ;;  %v1033_v42 = vadd.f32 %v1032_v52, %v1016_v41  ;;  %v1581_v4 = vunpack.c.h.bf16 %v1640_v25  ;;  %v1020_v46 = vmul.f32 %v1577_v31, %v2168_v19 }
 0x1b9   :  { %v962_v15 = vadd.f32 %v961_v3, %v945_v27  ;;  %v1584_v58 = vunpack.c.l.bf16 %v1641_v62  ;;  %v1021_v36 = vmul.f32 %v1580_v16, %v2173_v20  ;;  %v1585_v0 = vunpack.c.h.bf16 %v1641_v62  ;;  %v19_v27 = vld [vmem:[%s2479_s3 + $0x8] sm:$0xff] }
 0x1ba   :  { %v891_v7 = vadd.f32 %v890_v9, %v889_v8  ;;  %v1034_v32 = vadd.f32 %v1033_v42, %v1017_v21  ;;  %v1022_v60 = vmul.f32 %v1581_v4, %v2178_v43  ;;  %v1588_v11 = vunpack.c.l.bf16 %v1642_v28 }
 0x1bb   :  { %v963_v56 = vadd.f32 %v962_v15, %v946_v37  ;;  %v1023_v38 = vmul.f32 %v1584_v58, %v2183_v55  ;;  %v1589_v59 = vunpack.c.h.bf16 %v1642_v28  ;;  %v1024_v48 = vmul.f32 %v1585_v0, %v2188_v23 }
 0x1bc   :  { %892 = vst [vmem:[#allocation2 + $0x3] sm:$0x1] %v891_v7  ;;  %v1035_v61 = vadd.f32 %v1034_v32, %v1018_v18  ;;  %v1025_v50 = vmul.f32 %v1588_v11, %v2193_v29  ;;  %vm1052_vm6 = vcmask 261120   ;;  %vm1075_vm7 = vcmask 7168   ;;  %v20_v32 = vld [vmem:[%s2479_s3 + $0x10] sm:$0xff] }
 0x1bd   :  { %v964_v40 = vadd.f32 %v963_v56, %v947_v12  ;;  %v1026_v6 = vmul.f32 %v1589_v59, %v2201_v26  ;;  %vm1077_vm8 = vcmask 15360   ;;  %vm1079_vm9 = vcmask 23552  }
 0x1be   :  { %v1036_v47 = vadd.f32 %v1035_v61, %v1019_v17  ;;  %vm1105_vm10 = vcmask 31744   ;;  %vm1107_vm11 = vcmask 48128  }
 0x1bf   :  { %v965_v35 = vrot.slane %v964_v40, 4 }
 0x1c0   :  { %v1037_v44 = vadd.f32 %v1036_v47, %v1020_v46 }
 0x1c1   :  { %v966_v33 = vadd.f32 %v965_v35, %v964_v40 }
 0x1c2   :  { %v1038_v39 = vadd.f32 %v1037_v44, %v1021_v36 }
 0x1c3   :  { %v967_v53 = vrot.slane %v966_v33, 2 }
 0x1c4   :  { %v1039_v19 = vadd.f32 %v1038_v39, %v1022_v60 }
 0x1c5   :  { %v968_v63 = vadd.f32 %v967_v53, %v966_v33 }
 0x1c6   :  { %v1040_v20 = vadd.f32 %v1039_v19, %v1023_v38 }
 0x1c7   :  { %v969_v34 = vrot.slane %v968_v63, 1 }
 0x1c8   :  { %v1041_v30 = vadd.f32 %v1040_v20, %v1024_v48 }
 0x1c9   :  { %v970_v2 = vadd.f32 %v969_v34, %v968_v63 }
 0x1ca   :  { %v1042_v57 = vadd.f32 %v1041_v30, %v1025_v50 }
 0x1cb   :  { %971 = vst [vmem:[#allocation2 + $0x4] sm:$0x1] %v970_v2 }
 0x1cc   :  { %v1043_v43 = vadd.f32 %v1042_v57, %v1026_v6 }
 0x1ce   :  { %v1044_v5 = vrot.slane %v1043_v43, 4 }
 0x1d0   :  { %v1045_v14 = vadd.f32 %v1044_v5, %v1043_v43 }
 0x1d2   :  { %v1046_v13 = vrot.slane %v1045_v14, 2 }
 0x1d4   :  { %v1047_v55 = vadd.f32 %v1046_v13, %v1045_v14 }
 0x1d6   :  { %v1048_v45 = vrot.slane %v1047_v55, 1 }
 0x1d8   :  { %v1049_v8 = vadd.f32 %v1048_v45, %v1047_v55 }
 0x1da   :  { %1050 = vst [vmem:[#allocation2 + $0x5] sm:$0x1] %v1049_v8 }
 0x1e1   :  { %v1051_v1 = vld [vmem:[#allocation2] sm:$0xff] }
 0x1e2   :  { %1069 = vrot.lane.b32.xlu1 %v1051_v1, %s1678_s2  ;;  %1057 = vrot.lane.b32.xlu0 %v1051_v1, %s1679_s0  ;;  %v1053_v23 = vsel %vm1052_vm6, %v1051_v1, 0.0 }
 0x1ea   :  { %1063 = vrot.lane.b32.xlu0 %v1051_v1, %s1680_s12 }
 0x20c   :  { %1054 = vadd.xlane.f32.xlu1 %v1053_v23 }
 0x254   :  { %v1070_v29 = vpop.permute.xlu1 %1069  ;;  %v1058_v26 = vpop.permute.xlu0 %1057 }
 0x255   :  { %v1072_v10 = vsel %vm1052_vm6, %v1070_v29, 0.0  ;;  %v1060_v49 = vsel %vm1052_vm6, %v1058_v26, 0.0 }
 0x256   :  { %1073 = vadd.xlane.f32.xlu0 %v1072_v10  ;;  %1061 = vadd.xlane.f32.xlu2 %v1060_v49 }
 0x25c   :  { %v1064_v24 = vpop.permute.xlu0 %1063 }
 0x25d   :  { %v1066_v51 = vsel %vm1052_vm6, %v1064_v24, 0.0 }
 0x25e   :  { %1067 = vadd.xlane.f32.xlu2 %v1066_v51 }
 0x27f   :  { %v1055_v52 = vpop.xlane.xlu1 %1054 }
 0x2c9   :  { %v1062_v41 = vpop.xlane.xlu2 %1061  ;;  %v1074_v3 = vpop.xlane.xlu0 %1073 }
 0x2ca   :  { %v1076_v9 = vsel %vm1075_vm7, %v1055_v52, %v1062_v41 }
 0x2d1   :  { %v1068_v54 = vpop.xlane.xlu2 %1067 }
 0x2d2   :  { %v1078_v22 = vsel %vm1077_vm8, %v1076_v9, %v1068_v54 }
 0x2d3   :  { %v1080_v21 = vsel %vm1079_vm9, %v1078_v22, %v1074_v3 }
 0x2d4   :  { %v1081_v42 = vadd.f32 %v1080_v21, %v19_v27 }
 0x2d6   :  { %1083 = vrot.lane.b32.xlu2 %v1081_v42, %s1681_s15 }
 0x2de   :  { %1087 = vrot.lane.b32.xlu2 %v1081_v42, %s1682_s16 }
 0x330   :  { %v1084_v7 = vpop.permute.xlu2 %1083 }
 0x331   :  { %v1086_v37 = vsel %vm1075_vm7, %v1081_v42, %v1084_v7 }
 0x332   :  { %1097 = vrot.lane.b32.xlu2 %v1086_v37, %s1683_s17 }
 0x338   :  { %v1088_v15 = vpop.permute.xlu2 %1087 }
 0x339   :  { %v1090_v25 = vsel %vm1075_vm7, %v1084_v7, %v1088_v15 }
 0x33a   :  { %1101 = vrot.lane.b32.xlu1 %v1090_v25, %s1684_s18  ;;  %v1091_v31 = vmul.f32 0.5, %v1090_v25 }
 0x33c   :  { %v1092_v18 = vmul.f32 1.442695, %v1091_v31 }
 0x33e   :  { %1674 = vpow2.f32 %v1092_v18 }
 0x344   :  { %v1675_v12 = vpop.eup %1674 }
 0x345   :  { %v1094_v56 = vmul.f32 %v1675_v12, %v20_v32 }
 0x347   :  { %v1095_v16 = vadd.f32 %v1094_v56, %v1086_v37 }
 0x38c   :  { %v1098_v17 = vpop.permute.xlu2 %1097 }
 0x38d   :  { %v1104_v61 = vsel %vm1077_vm8, %v1095_v16, %v1098_v17 }
 0x3ac   :  { %v1102_v40 = vpop.permute.xlu1 %1101 }
 0x3ad   :  { %v1106_v62 = vsel %vm1105_vm10, %v1104_v61, %v1102_v40 }
 0x3ae   :  { %v1108_v4 = vsel %vm1107_vm11, %v1106_v62, 0.0 }
 0x3af   :  { %1109 = vst [vmem:[%s2481_s4] sm:$0xff] %v1108_v4 }

</bundles_post_ra>
